<compile_context>
chip_gen: v7x
topology: tpu7x:2x2x1
jax: 0.10.0
libtpu: 0.0.40
codegen_flags: <defaults>
</compile_context>

<pallas_src>
import math
import functools

import jax
import jax.numpy as jnp
import numpy as np
from jax import lax
from jax.experimental import pallas as pl
from jax.experimental.pallas import tpu as pltpu


# ----------------------------------------------------------------------------
# Pallas kernel: one (batch, head) pair per grid point
# ----------------------------------------------------------------------------
def _bert_self_attention_kernel(x_ref, mask_ref, wqkv_ref, bqkv_ref,
                                ctx_ref, probs_ref, *, head_size):
  f32 = jnp.float32
  dh = head_size

  x = x_ref[0]                 # (S, D)
  w = wqkv_ref[0]              # (D, 3*dh)  fused [Wq | Wk | Wv] for this head
  b = bqkv_ref[0]              # (1, 3*dh)

  # Fused QKV projection: single lane-dense matmul (N = 3*dh, multiple of 128)
  qkv = jnp.dot(x, w, preferred_element_type=f32) + b          # (S, 3*dh)
  q = qkv[:, 0 * dh:1 * dh]
  k = qkv[:, 1 * dh:2 * dh]
  v = qkv[:, 2 * dh:3 * dh]

  # attention_scores = q @ k.T / sqrt(dh) + additive attention mask
  scores = lax.dot_general(q, k,
                           dimension_numbers=(((1,), (1,)), ((), ())),
                           preferred_element_type=f32)         # (S, S)
  scores = scores * (1.0 / math.sqrt(dh)) + mask_ref[0]        # (1,S) bcast

  # softmax over keys
  m = jnp.max(scores, axis=-1, keepdims=True)
  e = jnp.exp(scores - m)
  probs = e / jnp.sum(e, axis=-1, keepdims=True)
  # TODO(synk): training-mode dropout (attention_probs_dropout_prob > 0) and
  # the optional head_mask multiply are not implemented (eval / None path).

  ctx = jnp.dot(probs, v, preferred_element_type=f32)          # (S, dh)

  ctx_ref[0] = ctx.astype(ctx_ref.dtype)        # lane-dense (S, 128) store
  probs_ref[0, 0] = probs.astype(probs_ref.dtype)


# ----------------------------------------------------------------------------
# One-time parameter preprocessing (NOT in the per-call hot path)
# ----------------------------------------------------------------------------
def pack_qkv_params(wq, bq, wk, bk, wv, bv, num_heads):
  """Pack per-head fused QKV weights/biases.

  Weights are stored pre-transposed as (in_features, out_features) so the
  kernel computes y = x @ W + b.
  Returns wqkv: (H, D, 3*dh), bqkv: (H, 1, 3*dh).
  """
  D = wq.shape[0]
  dh = D // num_heads

  def heads_w(w):              # (D, D) -> (H, D, dh)
    return w.reshape(D, num_heads, dh).transpose(1, 0, 2)

  def heads_b(b):              # (D,) -> (H, 1, dh)
    return b.reshape(num_heads, 1, dh)

  wqkv = jnp.concatenate([heads_w(wq), heads_w(wk), heads_w(wv)], axis=-1)
  bqkv = jnp.concatenate([heads_b(bq), heads_b(bk), heads_b(bv)], axis=-1)
  return wqkv, bqkv


# ----------------------------------------------------------------------------
# Forward wrapper (4 dense inputs, parallel (batch, head) grid)
# ----------------------------------------------------------------------------
def bert_self_attention_forward(hidden_states, attention_mask, wqkv, bqkv,
                                *, num_heads, output_attentions=True):
  B, S, D = hidden_states.shape
  dh = D // num_heads
  mask = attention_mask.reshape(B, 1, S).astype(jnp.float32)   # additive mask

  kernel = functools.partial(_bert_self_attention_kernel, head_size=dh)

  ctx, probs = pl.pallas_call(
      kernel,
      grid=(B, num_heads),
      in_specs=[
          pl.BlockSpec((1, S, D), lambda b, h: (b, 0, 0)),         # x
          pl.BlockSpec((1, 1, S), lambda b, h: (b, 0, 0)),         # mask
          pl.BlockSpec((1, D, 3 * dh), lambda b, h: (h, 0, 0)),    # fused W
          pl.BlockSpec((1, 1, 3 * dh), lambda b, h: (h, 0, 0)),    # fused b
      ],
      out_specs=(
          pl.BlockSpec((1, S, dh), lambda b, h: (b, 0, h)),        # context
          pl.BlockSpec((1, 1, S, S), lambda b, h: (b, h, 0, 0)),   # probs
      ),
      out_shape=(
          jax.ShapeDtypeStruct((B, S, D), jnp.float32),
          jax.ShapeDtypeStruct((B, num_heads, S, S), jnp.float32),
      ),
      compiler_params=pltpu.CompilerParams(
          dimension_semantics=("parallel", "parallel")),
  )(hidden_states, mask, wqkv, bqkv)

  if output_attentions:
    return ctx, probs
  return (ctx,)


# ----------------------------------------------------------------------------
# Pure-JAX reference mirroring the PyTorch forward
# ----------------------------------------------------------------------------
def reference_forward(hidden_states, attention_mask, wq, bq, wk, bk, wv, bv,
                      *, num_heads):
  B, S, D = hidden_states.shape
  dh = D // num_heads
  q = hidden_states @ wq + bq
  k = hidden_states @ wk + bk
  v = hidden_states @ wv + bv

  def split(t):                                  # transpose_for_scores
    return t.reshape(B, S, num_heads, dh).transpose(0, 2, 1, 3)

  qh, kh, vh = split(q), split(k), split(v)
  scores = jnp.einsum('bhqd,bhkd->bhqk', qh, kh) / math.sqrt(dh)
  scores = scores + attention_mask               # (B,1,1,S) broadcasts
  probs = jax.nn.softmax(scores, axis=-1)
  ctx = jnp.einsum('bhqk,bhkd->bhqd', probs, vh)
  ctx = ctx.transpose(0, 2, 1, 3).reshape(B, S, D)
  return ctx, probs


# ----------------------------------------------------------------------------
if __name__ == "__main__":
  B, S = 2, 128
  num_heads, head_size = 2, 128
  D = num_heads * head_size        # hidden_size = all_head_size

  key = jax.random.PRNGKey(0)
  kx, kq, kk, kv, kbq, kbk, kbv = jax.random.split(key, 7)

  s = 0.05
  hidden_states = jax.random.normal(kx, (B, S, D), dtype=jnp.float32)
  wq = s * jax.random.normal(kq, (D, D), dtype=jnp.float32)   # (in, out)
  wk = s * jax.random.normal(kk, (D, D), dtype=jnp.float32)
  wv = s * jax.random.normal(kv, (D, D), dtype=jnp.float32)
  bq = s * jax.random.normal(kbq, (D,), dtype=jnp.float32)
  bk = s * jax.random.normal(kbk, (D,), dtype=jnp.float32)
  bv = s * jax.random.normal(kbv, (D,), dtype=jnp.float32)

  # Standard BERT additive mask: 0 = attend, -10000 = masked, shape (B,1,1,S).
  lengths = jnp.array([S - 16, S])                    # batch 0 pads last 16
  valid = jnp.arange(S)[None, :] < lengths[:, None]
  attention_mask = jnp.where(valid, 0.0, -10000.0).astype(jnp.float32)
  attention_mask = attention_mask[:, None, None, :]

  # One-time preprocessing of the Q/K/V linear parameters.
  wqkv, bqkv = pack_qkv_params(wq, bq, wk, bk, wv, bv, num_heads)

  ctx, probs = bert_self_attention_forward(
      hidden_states, attention_mask, wqkv, bqkv,
      num_heads=num_heads, output_attentions=True)
  jax.block_until_ready((ctx, probs))

  ref_ctx, ref_probs = reference_forward(
      hidden_states, attention_mask, wq, bq, wk, bk, wv, bv,
      num_heads=num_heads)

  np.testing.assert_allclose(np.asarray(ctx), np.asarray(ref_ctx),
                             rtol=1e-2, atol=1e-2)
  np.testing.assert_allclose(np.asarray(probs), np.asarray(ref_probs),
                             rtol=1e-2, atol=1e-2)

  print("KERNEL_OK")
</pallas_src>

<mosaic_0001>
module attributes {stable_mosaic.version = 11 : i64} {
  func.func @_bert_self_attention_kernel(%arg0: i32, %arg1: i32, %arg2: memref<1x128x256xf32, #tpu.memory_space<vmem>>, %arg3: memref<1x1x128xf32, #tpu.memory_space<vmem>>, %arg4: memref<1x256x384xf32, #tpu.memory_space<vmem>>, %arg5: memref<1x1x384xf32, #tpu.memory_space<vmem>>, %arg6: memref<1x128x128xf32, #tpu.memory_space<vmem>>, %arg7: memref<1x1x128x128xf32, #tpu.memory_space<vmem>>) attributes {dimension_semantics = [#tpu.dimension_semantics<parallel>, #tpu.dimension_semantics<parallel>], iteration_bounds = array<i64: 2, 2>, scalar_prefetch = 0 : i64, scratch_operands = 0 : i64, tpu.core_type = #tpu.core_type<tc>, window_params = [{transform_indices = @transform_0, window_bounds = array<i64: 1, 128, 256>}, {transform_indices = @transform_1, window_bounds = array<i64: 1, 1, 128>}, {transform_indices = @transform_2, window_bounds = array<i64: 1, 256, 384>}, {transform_indices = @transform_3, window_bounds = array<i64: 1, 1, 384>}, {transform_indices = @transform_4, window_bounds = array<i64: 1, 128, 128>}, {transform_indices = @transform_5, window_bounds = array<i64: 1, 1, 128, 128>}]} {
    %c0 = arith.constant 0 : index
    %c0_0 = arith.constant 0 : index
    %c0_1 = arith.constant 0 : index
    %0 = vector.load %arg2[%c0, %c0_0, %c0_1] : memref<1x128x256xf32, #tpu.memory_space<vmem>>, vector<1x128x256xf32>
    %1 = vector.shape_cast %0 : vector<1x128x256xf32> to vector<128x256xf32>
    %c0_2 = arith.constant 0 : index
    %c0_3 = arith.constant 0 : index
    %c0_4 = arith.constant 0 : index
    %2 = vector.load %arg4[%c0_2, %c0_3, %c0_4] : memref<1x256x384xf32, #tpu.memory_space<vmem>>, vector<1x256x384xf32>
    %3 = vector.shape_cast %2 : vector<1x256x384xf32> to vector<256x384xf32>
    %c0_5 = arith.constant 0 : index
    %c0_6 = arith.constant 0 : index
    %c0_7 = arith.constant 0 : index
    %4 = vector.load %arg5[%c0_5, %c0_6, %c0_7] : memref<1x1x384xf32, #tpu.memory_space<vmem>>, vector<1x1x384xf32>
    %5 = vector.shape_cast %4 : vector<1x1x384xf32> to vector<1x384xf32>
    %cst = arith.constant dense<0.000000e+00> : vector<128x384xf32>
    %6 = tpu.matmul %1, %3, %cst {dimension_numbers = #tpu.dot_dimension_numbers<[1], [0], [0], [1], [0, 0, 1, 1], [], []>} : vector<128x256xf32>, vector<256x384xf32>, vector<128x384xf32> -> vector<128x384xf32>
    %7 = vector.broadcast %5 : vector<1x384xf32> to vector<128x384xf32>
    %8 = arith.addf %6, %7 : vector<128x384xf32>
    %9 = vector.extract_strided_slice %8 {offsets = [0, 0], sizes = [128, 128], strides = [1, 1]} : vector<128x384xf32> to vector<128x128xf32>
    %10 = vector.extract_strided_slice %8 {offsets = [0, 128], sizes = [128, 128], strides = [1, 1]} : vector<128x384xf32> to vector<128x128xf32>
    %11 = vector.extract_strided_slice %8 {offsets = [0, 256], sizes = [128, 128], strides = [1, 1]} : vector<128x384xf32> to vector<128x128xf32>
    %cst_8 = arith.constant dense<0.000000e+00> : vector<128x128xf32>
    %12 = tpu.matmul %9, %10, %cst_8 {dimension_numbers = #tpu.dot_dimension_numbers<[1], [1], [0], [0], [0, 0, 1, 0], [], []>} : vector<128x128xf32>, vector<128x128xf32>, vector<128x128xf32> -> vector<128x128xf32>
    %cst_9 = arith.constant 0.0883883461 : f32
    %13 = vector.broadcast %cst_9 : f32 to vector<128x128xf32>
    %14 = arith.mulf %12, %13 : vector<128x128xf32>
    %c0_10 = arith.constant 0 : index
    %c0_11 = arith.constant 0 : index
    %c0_12 = arith.constant 0 : index
    %15 = vector.load %arg3[%c0_10, %c0_11, %c0_12] : memref<1x1x128xf32, #tpu.memory_space<vmem>>, vector<1x1x128xf32>
    %16 = vector.shape_cast %15 : vector<1x1x128xf32> to vector<1x128xf32>
    %17 = vector.broadcast %16 : vector<1x128xf32> to vector<128x128xf32>
    %18 = arith.addf %14, %17 : vector<128x128xf32>
    %cst_13 = arith.constant dense<0xFF800000> : vector<128xf32>
    %19 = vector.multi_reduction <maximumf>, %18, %cst_13 [1] : vector<128x128xf32> to vector<128xf32>
    %20 = vector.shape_cast %19 : vector<128xf32> to vector<128x1xf32>
    %21 = vector.broadcast %20 : vector<128x1xf32> to vector<128x128xf32>
    %22 = arith.subf %18, %21 : vector<128x128xf32>
    %23 = math.exp %22 : vector<128x128xf32>
    %cst_14 = arith.constant dense<0.000000e+00> : vector<128xf32>
    %24 = vector.multi_reduction <add>, %23, %cst_14 [1] : vector<128x128xf32> to vector<128xf32>
    %25 = vector.shape_cast %24 : vector<128xf32> to vector<128x1xf32>
    %26 = vector.broadcast %25 : vector<128x1xf32> to vector<128x128xf32>
    %27 = arith.divf %23, %26 : vector<128x128xf32>
    %cst_15 = arith.constant dense<0.000000e+00> : vector<128x128xf32>
    %28 = tpu.matmul %27, %11, %cst_15 {dimension_numbers = #tpu.dot_dimension_numbers<[1], [0], [0], [1], [0, 0, 1, 1], [], []>} : vector<128x128xf32>, vector<128x128xf32>, vector<128x128xf32> -> vector<128x128xf32>
    %c0_16 = arith.constant 0 : index
    %c0_17 = arith.constant 0 : index
    %c0_18 = arith.constant 0 : index
    %29 = vector.load %arg6[%c0_16, %c0_17, %c0_18] : memref<1x128x128xf32, #tpu.memory_space<vmem>>, vector<1x128x128xf32>
    %30 = vector.shape_cast %29 : vector<1x128x128xf32> to vector<128x128xf32>
    %31 = vector.shape_cast %28 : vector<128x128xf32> to vector<1x128x128xf32>
    tpu.vector_store %arg6[%c0_16, %c0_17, %c0_18], %31 {strides = array<i32>} : memref<1x128x128xf32, #tpu.memory_space<vmem>>, vector<1x128x128xf32>,
    %c0_19 = arith.constant 0 : index
    %c0_20 = arith.constant 0 : index
    %c0_21 = arith.constant 0 : index
    %c0_22 = arith.constant 0 : index
    %32 = vector.load %arg7[%c0_19, %c0_20, %c0_21, %c0_22] : memref<1x1x128x128xf32, #tpu.memory_space<vmem>>, vector<1x1x128x128xf32>
    %33 = vector.shape_cast %32 : vector<1x1x128x128xf32> to vector<128x128xf32>
    %34 = vector.shape_cast %27 : vector<128x128xf32> to vector<1x1x128x128xf32>
    tpu.vector_store %arg7[%c0_19, %c0_20, %c0_21, %c0_22], %34 {strides = array<i32>} : memref<1x1x128x128xf32, #tpu.memory_space<vmem>>, vector<1x1x128x128xf32>,
    return
  }
  func.func @transform_0(%arg0: i32, %arg1: i32) -> (i32, i32, i32) {
    %c0_i32 = arith.constant 0 : i32
    %c0_i32_0 = arith.constant 0 : i32
    %c0_i32_1 = arith.constant 0 : i32
    return %arg0, %c0_i32, %c0_i32_0 : i32, i32, i32
  }
  func.func @transform_1(%arg0: i32, %arg1: i32) -> (i32, i32, i32) {
    %c0_i32 = arith.constant 0 : i32
    %c0_i32_0 = arith.constant 0 : i32
    %c0_i32_1 = arith.constant 0 : i32
    return %arg0, %c0_i32, %c0_i32_0 : i32, i32, i32
  }
  func.func @transform_2(%arg0: i32, %arg1: i32) -> (i32, i32, i32) {
    %c0_i32 = arith.constant 0 : i32
    %c0_i32_0 = arith.constant 0 : i32
    %c0_i32_1 = arith.constant 0 : i32
    return %arg1, %c0_i32, %c0_i32_0 : i32, i32, i32
  }
  func.func @transform_3(%arg0: i32, %arg1: i32) -> (i32, i32, i32) {
    %c0_i32 = arith.constant 0 : i32
    %c0_i32_0 = arith.constant 0 : i32
    %c0_i32_1 = arith.constant 0 : i32
    return %arg1, %c0_i32, %c0_i32_0 : i32, i32, i32
  }
  func.func @transform_4(%arg0: i32, %arg1: i32) -> (i32, i32, i32) {
    %c0_i32 = arith.constant 0 : i32
    %c0_i32_0 = arith.constant 0 : i32
    return %arg0, %c0_i32, %arg1 : i32, i32, i32
  }
  func.func @transform_5(%arg0: i32, %arg1: i32) -> (i32, i32, i32, i32) {
    %c0_i32 = arith.constant 0 : i32
    %c0_i32_0 = arith.constant 0 : i32
    %c0_i32_1 = arith.constant 0 : i32
    return %arg0, %arg1, %c0_i32, %c0_i32_0 : i32, i32, i32, i32
  }
}

</mosaic_0001>

<bundles_post_ra>
// kernel: tpu_custom_call.1
= control target key start
LH: loop header
LB: loop body
LE: loop exit
PB: predicated region body
PF: predicated region fallthrough
CT: control target
= control target key end

     0   :  { %s3265_s0 = inlined_call_operand.hbm [shape: f32[2,128,256], index: 0, kind: input, shape index: {}]   ;;  %s3266_s1 = inlined_call_operand.vmem [shape: f32[2,1,128], index: 1, kind: input, shape index: {}]   ;;  %s3267_s2 = inlined_call_operand.hbm [shape: f32[2,256,384], index: 2, kind: input, shape index: {}]   ;;  %s3268_s3 = inlined_call_operand.vmem [shape: f32[2,1,384], index: 3, kind: input, shape index: {}]   ;;  %s3269_s4 = inlined_call_operand.hbm [shape: f32[2,128,256], index: 4, kind: output, shape index: {0}]   ;;  %s3270_s5 = inlined_call_operand.hbm [shape: f32[2,2,128,128], index: 5, kind: output, shape index: {1}]  }
   0x1   :  { %3284 = sst [smem:[#allocation19_spill]] %s3265_s0 }
   0x2   :  { %3285 = sst [smem:[#allocation20_spill]] %s3266_s1 }
   0x3   :  { %3286 = sst [smem:[#allocation21_spill]] %s3268_s3 }
   0x4   :  { %3287 = sst [smem:[#allocation22_spill]] %s3269_s4 }
   0x5   :  { %3288 = sst [smem:[#allocation23_spill]] %s3270_s5 }
   0x6   :  { %11 = vsyncpa [#allocation3], 0 }
   0x7   :  { %13 = vsyncpa [#allocation3 + $0x1], 0 }
   0x8   :  { %14 = vsyncpa [#allocation6], 0 }
   0x9   :  { %16 = vsyncpa [#allocation6 + $0x1], 0 }
   0xa   :  { %17 = vsyncpa [#allocation4], 0 }
   0xb   :  { %19 = vsyncpa [#allocation4 + $0x1], 0 }
   0xc   :  { %20 = vsyncpa [#allocation9], 0 }
   0xd   :  { %22 = vsyncpa [#allocation9 + $0x1], 0  ;;  %s2451_s18 = smov 0   ;;  %s2453_s19 = smov 0  }
   0xe   :  { %s2455_s20 = smov 0   ;;  %s2457_s21 = smov 0  }
   0xf   :  { %s2459_s22 = smov 0   ;;  %s2461_s23 = smov 0  }
  0x10   :  { %s2463_s24 = smov 0   ;;  %s2465_s25 = smov 0  }
  0x11   :  { %s2467_s26 = smov 0   ;;  %s2469_s27 = smov 0  }
  0x12   :  { %s2471_s28 = smov 0   ;;  %s2473_s29 = smov 0  }
  0x13   :  { %s2475_s30 = smov 0   ;;  %s2477_s6 = smov 0  }
  0x14 LB: > { %3289 = sst [smem:[#allocation14_spill]] %s2396_s28  ;;  %s1500_s7 = sadd.s32 4294967295, %s2408_s6   ;;  %s2408_s6 = sphi %s2477_s6, %s28_s6   ;;  %s2404_s30 = sphi %s2475_s30, %s3325_s30   ;;  %s2400_s29 = sphi %s2473_s29, %s3324_s29   ;;  %s2396_s28 = sphi %s2471_s28, %s3323_s28   ;;  %s2392_s27 = sphi %s2469_s27, %s3322_s27   ;;  %s2388_s26 = sphi %s2467_s26, %s3334_s26   ;;  %s2384_s25 = sphi %s2465_s25, %s3333_s25   ;;  %s2380_s24 = sphi %s2463_s24, %s3332_s24   ;;  %s2376_s23 = sphi %s2461_s23, %s3331_s23   ;;  %s2372_s22 = sphi %s2459_s22, %s3330_s22   ;;  %s2368_s21 = sphi %s2457_s21, %s3329_s21   ;;  %s2364_s20 = sphi %s2455_s20, %s3328_s20   ;;  %s2360_s19 = sphi %s2453_s19, %s3327_s19   ;;  %s2356_s18 = sphi %s2451_s18, %s3326_s18  }
  0x15   : > { %3290 = sst [smem:[#allocation15_spill]] %s2400_s29  ;;  %p54_p0 = scmp.ne.s32.totalorder %s2388_s26, %s2384_s25 }
  0x16   : > { %3291 = sst [smem:[#allocation16_spill]] %s2404_s30  ;;  %p3274_p1 = scmp.eq.s32.totalorder %s2408_s6, 0 }
  0x17   : > { %p60_p2 = scmp.ne.s32.totalorder %s2384_s25, %s2380_s24  ;;  %p2526_p3 = scmp.eq.s32.totalorder %s1500_s7, 0 }
  0x18   : > { %p2530_p4 = scmp.eq.s32.totalorder %s1500_s7, 3  ;;  %p56_p5 = por %p3274_p1, %p54_p0 }
  0x19   : > { %p2538_p6 = por %p2526_p3, %p60_p2  ;;  %p3273_p7 = scmp.lt.s32.totalorder %s2408_s6, 4 }
  0x1a   : > { %s3293_s11 = scalar_select %p2530_p4, 1, 0 }
  0x1b   : > { %s3294_s12 = scalar_select %p2538_p6, 1, 0 }
  0x1c   : > { %s218_s13 = sand.u32 1, %s2388_s26   ;;  %s1522_s14 = sshll.u32 %s2404_s30, 12 }
  0x1d   : > { %s1504_s15 = sshll.u32 %s218_s13, 8  ;;  %s3295_s0 = sld [smem:[#allocation19_spill]] }
  0x1e   : > { %s222_s7 = scalar_lea.vmem [#allocation2], %s1504_s15  ;;  %p2552_p8 = pnand %p3273_p7, %p56_p5 }
  0x1f   : > { %s229_s9 = sshll.u32 %s222_s7, 4  ;;  %s2558_s4 = scalar_lea.sflag [#allocation3], %s218_s13  ;;  %s2556_s9 = int_to_ptr.vmem [resolvable:$true] %s229_s9 }
  0x20   : > { %p2168_p10 = pneg %p2552_p8 }
  0x23   : > { %s2548_s24 = scalar_lea.hbm %s3295_s0, %s1522_s14  ;;  %s2171_s17 = scalar_lea.hbm %s3295_s0, 8192 }
  0x24   : > { %s2166_s16 = scalar_lea.hbm %s2548_s24, 4096  ;;  %p2172_p13 = scmp.lt.u32.totalorder %s2548_s24, %s3295_s0 }
  0x25   : > { %p2167_p9 = scmp.ne.s32.totalorder %s2548_s24, %s2166_s16  ;;  %p2173_p0 = scmp.lt.u32.totalorder %s2171_s17, %s2166_s16 }
  0x26   : > { %p2175_p5 = scmp.lt.u32.totalorder %s2166_s16, %s2548_s24 }
  0x27   : > { %p2169_p11 = pnand %p2168_p10, %p2167_p9  ;;  %p2174_p2 = por %p2173_p0, %p2172_p13 }
  0x29   : > { %p2170_p12 = pneg %p2169_p11  ;;  %p2176_p7 = por %p2175_p5, %p2174_p2 }
  0x2b   : > { %p2177_p1 = pnand %p2176_p7, %p2170_p12 }
  0x2d   : > { %2180 = shalt.err (!%p2177_p1)
}
  0x2e   : > { %s2181_s13 = scalar_lea.vmem %s2556_s9, 4096  ;;  %s2410_s14 = smov [#allocation2]  }
  0x2f   : > { %p2182_p9 = scmp.ne.s32.totalorder %s2556_s9, %s2181_s13  ;;  %s2186_s15 = sshll.u32 %s2410_s14, 4  ;;  %s2187_s15 = int_to_ptr.vmem [resolvable:$false] %s2186_s15 }
  0x30   : > { %s2188_s5 = scalar_lea.vmem %s2187_s15, 8192  ;;  %p2189_p4 = scmp.lt.s32.totalorder %s2556_s9, %s2187_s15 }
  0x31   : > { %p2184_p11 = pnand %p2182_p9, %p2168_p10  ;;  %p2190_p13 = scmp.lt.s32.totalorder %s2188_s5, %s2181_s13 }
  0x33   : > { %p2185_p6 = pneg %p2184_p11  ;;  %p2191_p0 = por %p2190_p13, %p2189_p4 }
  0x35   : > { %p2192_p2 = pnand %p2191_p0, %p2185_p6 }
  0x37   : > { %2195 = shalt.err (!%p2192_p2)
}
  0x38   : > { %s2411_s16 = smov 256   ;;  %s2412_s17 = smov 16  }
  0x39   : > { %1970 = dma.hbm_to_vmem [thread:$0]  (!%p2552_p8), %s2548_s24, 4096, %s2556_s9, %s2558_s4, %s2411_s16, %s2411_s16, %s2412_s17  }
  0x3a   : > { %p1508_p1 = scmp.ge.s32.totalorder %s2408_s6, 1  ;;  %p271_p4 = scmp.lt.s32.totalorder %s2408_s6, 5 }
  0x3b   : > { %s1501_s13 = sadd.s32 4294967294, %s2408_s6   ;;  %s37_s14 = sadd.s32 1, %s2400_s29 }
  0x3c   : > { %p2588_p6 = pnand %p1508_p1, %p271_p4  ;;  %s99_s15 = sadd.s32 1, %s2376_s23 }
  0x3d   : > { %p38_p7 = scmp.ge.s32.totalorder %s37_s14, 2  ;;  %p106_p10 = scmp.ne.s32.totalorder %s2376_s23, %s2372_s22 }
  0x3e   : > { %p112_p12 = scmp.ne.s32.totalorder %s2372_s22, %s2368_s21  ;;  %s153_s8 = sadd.s32 1, %s2364_s20 }
  0x3f   : > { %s3336_s14 = smov (%p38_p7, %s37_s14), 0  ;;  %s3299_s4 = sadd.s32 1, %s2404_s30 }
  0x40   : > { %3298 = sst [smem:[#allocation17_spill]] %s3336_s14  ;;  %s3338_s4 = smov (!%p38_p7, %s3299_s4), %s2404_s30 }
  0x41   : > { %s96_s9 = ssub.s32 %s2400_s29, %s3336_s14  ;;  %p3300_p8 = scmp.eq.s32.totalorder %s2408_s6, 0 }
  0x42   : > { %p42_p9 = scmp.ge.s32.totalorder %s3338_s4, 2  ;;  %p97_p11 = scmp.eq.s32.totalorder %s96_s9, 0 }
  0x43   : > { %p2609_p5 = por %p106_p10, %p3300_p8  ;;  %p2615_p13 = por %p112_p12, %p2526_p3 }
  0x44   : > { %p163_p0 = scmp.ne.s32.totalorder %s2364_s20, %s2360_s19  ;;  %s3340_s4 = smov (%p42_p9, %s3338_s4), 0 }
  0x45   : > { %s3302_s21 = scalar_select %p2615_p13, 1, 0 }
  0x46   : > { %3303 = sst [smem:[#allocation18_spill]] %s3340_s4  ;;  %s44_s16 = ssub.s32 %s2404_s30, %s3340_s4 }
  0x47   : > { %s2624_s5 = scalar_select %p97_p11, %s2376_s23, %s99_s15  }
  0x48   : > { %p3304_p2 = scmp.ne.s32.totalorder %s3293_s11, 0  ;;  %p45_p4 = scmp.eq.s32.totalorder %s44_s16, 0 }
  0x49   : > { %s150_s10 = sor.u32 %s96_s9, %s44_s16  ;;  %p169_p7 = scmp.ne.s32.totalorder %s2360_s19, %s2356_s18 }
  0x4a   : > { %p2630_p1 = por %p3304_p2, %p163_p0  ;;  %p151_p3 = scmp.eq.s32.totalorder %s150_s10, 0 }
  0x4b   : > { %s3306_s0 = sadd.s32 1, %s2388_s26  ;;  %p170_p10 = scmp.eq.s32.totalorder %s1501_s13, 3 }
  0x4c   : > { %s3305_s17 = scalar_select %p2630_p1, 1, 0 }
  0x4d   : > { %s2639_s14 = scalar_select %p45_p4, %s2388_s26, %s3306_s0  }
  0x4e   : > { %s2642_s1 = scalar_select %p151_p3, %s2364_s20, %s153_s8  }
  0x4f   : > { %s245_s28 = sand.u32 1, %s2376_s23   ;;  %p2645_p12 = por %p170_p10, %p169_p7 }
  0x50   : > { %s1955_s3 = smul.u32 768, %s245_s28  ;;  %p3308_p8 = scmp.lt.s32.totalorder %s2408_s6, 4 }
  0x51   : > { %s3307_s15 = scalar_select %p2645_p12, 1, 0 }
  0x52   : > { %s1956_s11 = smul.u32 12288, %s2400_s29  ;;  %p2654_p9 = pnand %p3308_p8, %p2609_p5 }
  0x53   : > { %s249_s13 = scalar_lea.vmem [#allocation5], %s1955_s3  ;;  %s2665_s24 = scalar_lea.sflag [#allocation6], %s245_s28 }
  0x54   : > { %s2661_s0 = scalar_lea.hbm %s3267_s2, %s1956_s11  ;;  %s256_s8 = sshll.u32 %s249_s13, 4  ;;  %s2663_s8 = int_to_ptr.vmem [resolvable:$true] %s256_s8 }
  0x55   : > { %s2196_s10 = scalar_lea.hbm %s2661_s0, 12288  ;;  %p2198_p11 = pneg %p2654_p9 }
  0x56   : > { %p2197_p5 = scmp.ne.s32.totalorder %s2661_s0, %s2196_s10  ;;  %s2201_s16 = scalar_lea.hbm %s3267_s2, 24576 }
  0x57   : > { %p2202_p4 = scmp.lt.u32.totalorder %s2661_s0, %s3267_s2  ;;  %p2203_p3 = scmp.lt.u32.totalorder %s2201_s16, %s2196_s10 }
  0x58   : > { %p2199_p0 = pnand %p2198_p11, %p2197_p5  ;;  %p2205_p10 = scmp.lt.u32.totalorder %s2196_s10, %s2661_s0 }
  0x59   : > { %p2204_p7 = por %p2203_p3, %p2202_p4 }
  0x5a   : > { %p2200_p2 = pneg %p2199_p0 }
  0x5b   : > { %p2206_p8 = por %p2205_p10, %p2204_p7 }
  0x5d   : > { %p2207_p12 = pnand %p2206_p8, %p2200_p2 }
  0x5f   : > { %2210 = shalt.err (!%p2207_p12)
}
  0x60   : > { %s2211_s3 = scalar_lea.vmem %s2663_s8, 12288  ;;  %s2413_s28 = smov [#allocation5]  }
  0x61   : > { %p2212_p5 = scmp.ne.s32.totalorder %s2663_s8, %s2211_s3  ;;  %s2216_s13 = sshll.u32 %s2413_s28, 4  ;;  %s2217_s13 = int_to_ptr.vmem [resolvable:$false] %s2216_s13 }
  0x62   : > { %s2218_s29 = scalar_lea.vmem %s2217_s13, 24576  ;;  %p2219_p13 = scmp.lt.s32.totalorder %s2663_s8, %s2217_s13 }
  0x63   : > { %p2214_p0 = pnand %p2212_p5, %p2198_p11  ;;  %p2220_p4 = scmp.lt.s32.totalorder %s2218_s29, %s2211_s3 }
  0x65   : > { %p2215_p1 = pneg %p2214_p0  ;;  %p2221_p3 = por %p2220_p4, %p2219_p13 }
  0x67   : > { %p2222_p7 = pnand %p2221_p3, %p2215_p1 }
  0x69   : > { %2225 = shalt.err (!%p2222_p7)
}
  0x6a   : > { %s2414_s30 = smov 384   ;;  %s2415_s10 = smov 24  }
  0x6b   : > { %1973 = dma.hbm_to_vmem [thread:$0]  (!%p2654_p9), %s2661_s0, 12288, %s2663_s8, %s2665_s24, %s2414_s30, %s2414_s30, %s2415_s10  }
  0x6c   : > { %275 = sbr.rel (%p2588_p6) target bundleno = 1273 (0x4f9), region = 36  ;;  %s277_s11 = sand.u32 (!%p2588_p6), 1, %s2384_s25  }
  0x6d   : > { %s1509_s9 = sshll.u32 (!%p2588_p6), %s277_s11, 8  ;;  %s278_s16 = scalar_lea.sflag (!%p2588_p6), [#allocation3], %s277_s11 }
  0x6e   : > { %s2696_s3 = scalar_lea.vmem (!%p2588_p6), [#allocation2], %s1509_s9  ;;  %p3310_p13 = scmp.ne.s32.totalorder (!%p2588_p6), %s3294_s12, 0 }
  0x73   : > { %2339 = dma.done.wait (%p3310_p13), %s278_s16, 4096  }
  0x74   : > { %2341 = vsyncadd (%p3310_p13), %s278_s16, 4294963200  ;;  %s286_s28 = sand.u32 1, %s2372_s22   ;;  %p3311_p6 = scmp.ne.s32.totalorder %s3302_s21, 0 }
  0x75   : > { %s1957_s4 = smul.u32 768, %s286_s28  ;;  %s287_s0 = scalar_lea.sflag [#allocation6], %s286_s28 }
  0x77   : > { %s2703_s8 = scalar_lea.vmem [#allocation5], %s1957_s4 }
  0x78   : > { %2343 = dma.done.wait (%p3311_p6), %s287_s0, 12288  }
  0x79   : > { %2345 = vsyncadd (%p3311_p6), %s287_s0, 4294955008  ;;  %v374_v0 = vld [vmem:[%s2703_s8 + $0x8] sm:$0xff]  ;;  %v377_v1 = vld [vmem:[%s2703_s8 + $0x20] sm:$0xff]  ;;  %p337_p1 = scmp.lt.s32.totalorder %s2392_s27, 1  ;;  %s3312_s13 = sld [smem:[#allocation21_spill]] }
  0x7a   : > { %v373_v2 = vld [vmem:[%s2703_s8] sm:$0xff]  ;;  %v1779_v3 = vpack.c.bf16 %v377_v1, %v374_v0  ;;  %v376_v4 = vld [vmem:[%s2703_s8 + $0x18] sm:$0xff]  ;;  %v383_v6 = vld [vmem:[%s2703_s8 + $0x50] sm:$0xff]  ;;  %s3313_s30 = sld [smem:[#allocation14_spill]]  ;;  %s3078_s28 = sand.u32 1, %s2360_s19  }
  0x7b   : > { %v380_v5 = vld [vmem:[%s2703_s8 + $0x38] sm:$0xff]  ;;  %v1781_v7 = vpack.c.bf16 %v376_v4, %v373_v2  ;;  %v379_v9 = vld [vmem:[%s2703_s8 + $0x30] sm:$0xff]  ;;  %v382_v10 = vld [vmem:[%s2703_s8 + $0x48] sm:$0xff]  ;;  %s338_s12 = scalar_select %p337_p1, %s2392_s27, 1 }
  0x7c   : > { %v1783_v8 = vpack.c.bf16 %v383_v6, %v380_v5  ;;  %v386_v11 = vld [vmem:[%s2703_s8 + $0x68] sm:$0xff]  ;;  %1780 = vmatprep.subr.bf16.mxu0 %v1779_v3  ;;  %v389_v12 = vld [vmem:[%s2703_s8 + $0x80] sm:$0xff]  ;;  %v1785_v13 = vpack.c.bf16 %v382_v10, %v379_v9  ;;  %v388_v16 = vld [vmem:[%s2703_s8 + $0x78] sm:$0xff]  ;;  %s3314_s16 = sld [smem:[#allocation20_spill]]  ;;  %s3283_s4 = sshll.u32 %s3078_s28, 7 }
  0x7d   : > { %1782 = vmatpush1.bf16.msra.mxu0 %v1781_v7  ;;  %v1787_v14 = vpack.c.bf16 %v389_v12, %v386_v11  ;;  %v385_v15 = vld [vmem:[%s2703_s8 + $0x60] sm:$0xff]  ;;  %v392_v17 = vld [vmem:[%s2703_s8 + $0x98] sm:$0xff]  ;;  %v395_v18 = vld [vmem:[%s2703_s8 + $0xb0] sm:$0xff]  ;;  %s1958_s7 = smul.u32 3, %s338_s12  ;;  %s3084_s0 = scalar_lea.vmem [#allocation8], %s3283_s4 }
  0x7e   : > { %1784 = vmatprep.subr.bf16.mxu0 %v1783_v8  ;;  %v1789_v19 = vpack.c.bf16 %v388_v16, %v385_v15  ;;  %v1791_v20 = vpack.c.bf16 %v395_v18, %v392_v17  ;;  %v391_v21 = vld [vmem:[%s2703_s8 + $0x90] sm:$0xff]  ;;  %v394_v22 = vld [vmem:[%s2703_s8 + $0xa8] sm:$0xff]  ;;  %v401_v24 = vld [vmem:[%s2703_s8 + $0xe0] sm:$0xff]  ;;  %s1517_s12 = sshll.u32 %s2392_s27, 4  ;;  %s1335_s9 = sshll.u32 %s3084_s0, 4  ;;  %s3127_s9 = int_to_ptr.vmem [resolvable:$true] %s1335_s9 }
  0x7f   : > { %v398_v23 = vld [vmem:[%s2703_s8 + $0xc8] sm:$0xff]  ;;  %v1793_v25 = vpack.c.bf16 %v394_v22, %v391_v21  ;;  %v397_v27 = vld [vmem:[%s2703_s8 + $0xc0] sm:$0xff]  ;;  %v400_v28 = vld [vmem:[%s2703_s8 + $0xd8] sm:$0xff]  ;;  %s340_s29 = scalar_lea.vmem %s3312_s13, %s1958_s7  ;;  %p3317_p11 = scmp.ne.s32.totalorder %s3305_s17, 0 }
  0x80   : > { %v1795_v26 = vpack.c.bf16 %v401_v24, %v398_v23  ;;  %v404_v29 = vld [vmem:[%s2703_s8 + $0xf8] sm:$0xff]  ;;  %v407_v30 = vld [vmem:[%s2703_s8 + $0x110] sm:$0xff]  ;;  %v1797_v31 = vpack.c.bf16 %v400_v28, %v397_v27  ;;  %v406_v34 = vld [vmem:[%s2703_s8 + $0x108] sm:$0xff]  ;;  %p334_p12 = scmp.lt.s32.totalorder %s3313_s30, 1  ;;  %s2416_s4 = smov [#allocation8]  }
  0x81   : > { %1786 = vmatpush1.bf16.msra.mxu0 %v1785_v13  ;;  %v1799_v32 = vpack.c.bf16 %v407_v30, %v404_v29  ;;  %v403_v33 = vld [vmem:[%s2703_s8 + $0xf0] sm:$0xff]  ;;  %v410_v35 = vld [vmem:[%s2703_s8 + $0x128] sm:$0xff]  ;;  %v413_v36 = vld [vmem:[%s2703_s8 + $0x140] sm:$0xff] }
  0x82   : > { %1788 = vmatprep.subr.bf16.mxu0 %v1787_v14  ;;  %v1801_v37 = vpack.c.bf16 %v406_v34, %v403_v33  ;;  %v1803_v38 = vpack.c.bf16 %v413_v36, %v410_v35  ;;  %v409_v39 = vld [vmem:[%s2703_s8 + $0x120] sm:$0xff]  ;;  %v412_v40 = vld [vmem:[%s2703_s8 + $0x138] sm:$0xff]  ;;  %v342_v41 = vld [vmem:[%s2696_s3 + $0x8] sm:$0xff]  ;;  %s335_s10 = scalar_select %p334_p12, %s3313_s30, 1 }
  0x83   : > { %v416_v42 = vld [vmem:[%s2703_s8 + $0x158] sm:$0xff]  ;;  %v419_v43 = vld [vmem:[%s2703_s8 + $0x170] sm:$0xff]  ;;  %550 = vmatprep.mubr.f32.mxu0 %v342_v41  ;;  %711 = vmatprep.mubr.f32.mxu1 %v342_v41  ;;  %v1805_v44 = vpack.c.bf16 %v412_v40, %v409_v39  ;;  %v418_v47 = vld [vmem:[%s2703_s8 + $0x168] sm:$0xff] }
  0x84   : > { %v1807_v45 = vpack.c.bf16 %v419_v43, %v416_v42  ;;  %v415_v46 = vld [vmem:[%s2703_s8 + $0x150] sm:$0xff]  ;;  %v422_v48 = vld [vmem:[%s2703_s8 + $0x188] sm:$0xff]  ;;  %v425_v49 = vld [vmem:[%s2703_s8 + $0x1a0] sm:$0xff] }
  0x85   : > { %1790 = vmatpush1.bf16.msra.mxu0 %v1789_v19  ;;  %v1809_v50 = vpack.c.bf16 %v418_v47, %v415_v46  ;;  %v1811_v51 = vpack.c.bf16 %v425_v49, %v422_v48  ;;  %v421_v52 = vld [vmem:[%s2703_s8 + $0x180] sm:$0xff]  ;;  %v424_v53 = vld [vmem:[%s2703_s8 + $0x198] sm:$0xff]  ;;  %v431_v55 = vld [vmem:[%s2703_s8 + $0x1d0] sm:$0xff] }
  0x86   : > { %1792 = vmatprep.subr.bf16.mxu0 %v1791_v20  ;;  %v428_v54 = vld [vmem:[%s2703_s8 + $0x1b8] sm:$0xff]  ;;  %v427_v56 = vld [vmem:[%s2703_s8 + $0x1b0] sm:$0xff]  ;;  %v430_v57 = vld [vmem:[%s2703_s8 + $0x1c8] sm:$0xff]  ;;  %v1813_v58 = vpack.c.bf16 %v424_v53, %v421_v52 }
  0x87   : > { %v434_v59 = vld [vmem:[%s2703_s8 + $0x1e8] sm:$0xff]  ;;  %v437_v60 = vld [vmem:[%s2703_s8 + $0x200] sm:$0xff]  ;;  %v423_v61 = vld [vmem:[%s2703_s8 + $0x190] sm:$0xff]  ;;  %v1815_v0 = vpack.c.bf16 %v431_v55, %v428_v54  ;;  %v1817_v11 = vpack.c.bf16 %v430_v57, %v427_v56 }
  0x88   : > { %v426_v62 = vld [vmem:[%s2703_s8 + $0x1a8] sm:$0xff]  ;;  %v375_v63 = vld [vmem:[%s2703_s8 + $0x10] sm:$0xff]  ;;  %v429_v3 = vld [vmem:[%s2703_s8 + $0x1c0] sm:$0xff]  ;;  %v1819_v15 = vpack.c.bf16 %v437_v60, %v434_v59 }
  0x89   : > { %1794 = vmatpush1.bf16.msra.mxu0 %v1793_v25  ;;  %v1843_v1 = vpack.c.bf16 %v426_v62, %v423_v61  ;;  %v378_v2 = vld [vmem:[%s2703_s8 + $0x28] sm:$0xff]  ;;  %v432_v4 = vld [vmem:[%s2703_s8 + $0x1d8] sm:$0xff]  ;;  %v381_v7 = vld [vmem:[%s2703_s8 + $0x40] sm:$0xff] }
  0x8a   : > { %1796 = vmatprep.subr.bf16.mxu0 %v1795_v26  ;;  %v1845_v5 = vpack.c.bf16 %v378_v2, %v375_v63  ;;  %v1847_v6 = vpack.c.bf16 %v432_v4, %v429_v3  ;;  %v384_v8 = vld [vmem:[%s2703_s8 + $0x58] sm:$0xff]  ;;  %v435_v9 = vld [vmem:[%s2703_s8 + $0x1f0] sm:$0xff]  ;;  %v438_v10 = vld [vmem:[%s2703_s8 + $0x208] sm:$0xff] }
  0x8b   : > { %1844 = vmatprep.subr.bf16.mxu1 %v1843_v1  ;;  %v433_v12 = vld [vmem:[%s2703_s8 + $0x1e0] sm:$0xff]  ;;  %v436_v13 = vld [vmem:[%s2703_s8 + $0x1f8] sm:$0xff]  ;;  %v1849_v14 = vpack.c.bf16 %v384_v8, %v381_v7  ;;  %v1851_v17 = vpack.c.bf16 %v438_v10, %v435_v9  ;;  %v387_v18 = vld [vmem:[%s2703_s8 + $0x70] sm:$0xff] }
  0x8c   : > { %1846 = vmatpush3.bf16.msra.mxu1 %v1845_v5  ;;  %v440_v16 = vld [vmem:[%s2703_s8 + $0x218] sm:$0xff]  ;;  %v390_v19 = vld [vmem:[%s2703_s8 + $0x88] sm:$0xff]  ;;  %v443_v20 = vld [vmem:[%s2703_s8 + $0x230] sm:$0xff]  ;;  %v1821_v23 = vpack.c.bf16 %v436_v13, %v433_v12 }
  0x8d   : > { %1798 = vmatpush1.bf16.msra.mxu0 %v1797_v31  ;;  %1848 = vmatprep.subr.bf16.mxu1 %v1847_v6  ;;  %v441_v21 = vld [vmem:[%s2703_s8 + $0x220] sm:$0xff]  ;;  %v444_v22 = vld [vmem:[%s2703_s8 + $0x238] sm:$0xff]  ;;  %v439_v24 = vld [vmem:[%s2703_s8 + $0x210] sm:$0xff]  ;;  %v1853_v26 = vpack.c.bf16 %v390_v19, %v387_v18  ;;  %v1823_v27 = vpack.c.bf16 %v443_v20, %v440_v16 }
  0x8e   : > { %1800 = vmatprep.subr.bf16.mxu0 %v1799_v32  ;;  %v442_v25 = vld [vmem:[%s2703_s8 + $0x228] sm:$0xff]  ;;  %v1855_v29 = vpack.c.bf16 %v444_v22, %v441_v21  ;;  %v393_v30 = vld [vmem:[%s2703_s8 + $0xa0] sm:$0xff]  ;;  %v396_v31 = vld [vmem:[%s2703_s8 + $0xb8] sm:$0xff] }
  0x8f   : > { %v446_v28 = vld [vmem:[%s2703_s8 + $0x248] sm:$0xff]  ;;  %v449_v32 = vld [vmem:[%s2703_s8 + $0x260] sm:$0xff]  ;;  %v447_v33 = vld [vmem:[%s2703_s8 + $0x250] sm:$0xff]  ;;  %v1825_v35 = vpack.c.bf16 %v442_v25, %v439_v24 }
  0x90   : > { %1850 = vmatpush3.bf16.msra.mxu1 %v1849_v14  ;;  %v450_v34 = vld [vmem:[%s2703_s8 + $0x268] sm:$0xff]  ;;  %v445_v36 = vld [vmem:[%s2703_s8 + $0x240] sm:$0xff]  ;;  %v1827_v39 = vpack.c.bf16 %v449_v32, %v446_v28  ;;  %v452_v40 = vld [vmem:[%s2703_s8 + $0x278] sm:$0xff] }
  0x91   : > { %1802 = vmatpush1.bf16.msra.mxu0 %v1801_v37  ;;  %1852 = vmatprep.subr.bf16.mxu1 %v1851_v17  ;;  %v448_v37 = vld [vmem:[%s2703_s8 + $0x258] sm:$0xff]  ;;  %v1859_v41 = vpack.c.bf16 %v450_v34, %v447_v33  ;;  %v399_v42 = vld [vmem:[%s2703_s8 + $0xd0] sm:$0xff]  ;;  %v402_v43 = vld [vmem:[%s2703_s8 + $0xe8] sm:$0xff] }
  0x92   : > { %1804 = vmatprep.subr.bf16.mxu0 %v1803_v38  ;;  %v1857_v38 = vpack.c.bf16 %v396_v31, %v393_v30  ;;  %v456_v46 = vld [vmem:[%s2703_s8 + $0x298] sm:$0xff]  ;;  %v1829_v47 = vpack.c.bf16 %v448_v37, %v445_v36  ;;  %v451_v48 = vld [vmem:[%s2703_s8 + $0x270] sm:$0xff]  ;;  %v454_v49 = vld [vmem:[%s2703_s8 + $0x288] sm:$0xff] }
  0x93   : > { %v458_v52 = vld [vmem:[%s2703_s8 + $0x2a8] sm:$0xff]  ;;  %v405_v54 = vld [vmem:[%s2703_s8 + $0x100] sm:$0xff]  ;;  %v408_v55 = vld [vmem:[%s2703_s8 + $0x118] sm:$0xff]  ;;  %v1833_v59 = vpack.c.bf16 %v454_v49, %v451_v48  ;;  %v471_v48 = vlaneseq }
  0x94   : > { %1854 = vmatpush3.bf16.msra.mxu1 %v1853_v26  ;;  %v461_v56 = vld [vmem:[%s2703_s8 + $0x2c0] sm:$0xff]  ;;  %v459_v57 = vld [vmem:[%s2703_s8 + $0x2b0] sm:$0xff]  ;;  %v460_v61 = vld [vmem:[%s2703_s8 + $0x2b8] sm:$0xff]  ;;  %v1865_v62 = vpack.c.bf16 %v408_v55, %v405_v54 }
  0x95   : > { %1806 = vmatpush1.bf16.msra.mxu0 %v1805_v44  ;;  %1856 = vmatprep.subr.bf16.mxu1 %v1855_v29  ;;  %v455_v44 = vld [vmem:[%s2703_s8 + $0x290] sm:$0xff]  ;;  %v457_v60 = vld [vmem:[%s2703_s8 + $0x2a0] sm:$0xff]  ;;  %v1835_v63 = vpack.c.bf16 %v461_v56, %v458_v52  ;;  %v414_v3 = vld [vmem:[%s2703_s8 + $0x148] sm:$0xff]  ;;  %v472_v49 = vshrl.u32 %v471_v48, 7 }
  0x96   : > { %1808 = vmatprep.subr.bf16.mxu0 %v1807_v45  ;;  %v453_v45 = vld [vmem:[%s2703_s8 + $0x280] sm:$0xff]  ;;  %v411_v2 = vld [vmem:[%s2703_s8 + $0x130] sm:$0xff]  ;;  %v468_v6 = vld [vmem:[%s2703_s8 + $0x2f8] sm:$0xff]  ;;  %v1837_v7 = vpack.c.bf16 %v460_v61, %v457_v60 }
  0x97   : > { %v1863_v53 = vpack.c.bf16 %v456_v46, %v453_v45  ;;  %v467_v4 = vld [vmem:[%s2703_s8 + $0x2f0] sm:$0xff]  ;;  %v465_v5 = vld [vmem:[%s2703_s8 + $0x2e0] sm:$0xff]  ;;  %v1869_v9 = vpack.c.bf16 %v414_v3, %v411_v2  ;;  %v420_v14 = vld [vmem:[%s2703_s8 + $0x178] sm:$0xff]  ;;  %v481_v54 = vsub.s32 2, %v472_v49 }
  0x98   : > { %1858 = vmatpush3.bf16.msra.mxu1 %v1857_v38  ;;  %v463_v8 = vld [vmem:[%s2703_s8 + $0x2d0] sm:$0xff]  ;;  %v1871_v12 = vpack.c.bf16 %v468_v6, %v465_v5  ;;  %v417_v13 = vld [vmem:[%s2703_s8 + $0x160] sm:$0xff]  ;;  %v344_v18 = vld [vmem:[%s2696_s3 + $0x18] sm:$0xff] }
  0x99   : > { %1810 = vmatpush1.bf16.msra.mxu0 %v1809_v50  ;;  %v1861_v50 = vpack.c.bf16 %v402_v43, %v399_v42  ;;  %1860 = vmatprep.subr.bf16.mxu1 %v1859_v41  ;;  %v1873_v16 = vpack.c.bf16 %v420_v14, %v417_v13  ;;  %v341_v17 = vld [vmem:[%s2696_s3] sm:$0xff]  ;;  %v343_v19 = vld [vmem:[%s2696_s3 + $0x10] sm:$0xff]  ;;  %v346_v20 = vld [vmem:[%s2696_s3 + $0x28] sm:$0xff] }
  0x9a   : > { %1812 = vmatprep.subr.bf16.mxu0 %v1811_v51  ;;  %v1831_v51 = vpack.c.bf16 %v455_v44, %v452_v40  ;;  %v345_v21 = vld [vmem:[%s2696_s3 + $0x20] sm:$0xff]  ;;  %v348_v22 = vld [vmem:[%s2696_s3 + $0x38] sm:$0xff]  ;;  %v350_v24 = vld [vmem:[%s2696_s3 + $0x48] sm:$0xff] }
  0x9b   : > { %v349_v25 = vld [vmem:[%s2696_s3 + $0x40] sm:$0xff]  ;;  %v352_v26 = vld [vmem:[%s2696_s3 + $0x58] sm:$0xff]  ;;  %v354_v28 = vld [vmem:[%s2696_s3 + $0x68] sm:$0xff] }
  0x9c   : > { %1862 = vmatpush3.bf16.msra.mxu1 %v1861_v50  ;;  %v353_v29 = vld [vmem:[%s2696_s3 + $0x60] sm:$0xff]  ;;  %v356_v30 = vld [vmem:[%s2696_s3 + $0x78] sm:$0xff]  ;;  %v355_v31 = vld [vmem:[%s2696_s3 + $0x70] sm:$0xff]  ;;  %v473_v50 = vsub.s32 0, %v472_v49 }
  0x9d   : > { %1814 = vmatpush1.bf16.msra.mxu0 %v1813_v58  ;;  %v462_v58 = vld [vmem:[%s2703_s8 + $0x2c8] sm:$0xff]  ;;  %1864 = vmatprep.subr.bf16.mxu1 %v1863_v53  ;;  %v357_v33 = vld [vmem:[%s2696_s3 + $0x80] sm:$0xff]  ;;  %v360_v34 = vld [vmem:[%s2696_s3 + $0x98] sm:$0xff]  ;;  %v477_v53 = vsub.s32 1, %v472_v49 }
  0x9e   : > { %1816 = vmatprep.subr.bf16.mxu0 %v1815_v0  ;;  %v464_v0 = vld [vmem:[%s2703_s8 + $0x2d8] sm:$0xff]  ;;  %v1867_v1 = vpack.c.bf16 %v462_v58, %v459_v57  ;;  %v358_v32 = vld [vmem:[%s2696_s3 + $0x88] sm:$0xff]  ;;  %v361_v37 = vld [vmem:[%s2696_s3 + $0xa0] sm:$0xff] }
  0x9f   : > { %v1839_v10 = vpack.c.bf16 %v467_v4, %v464_v0  ;;  %v362_v36 = vld [vmem:[%s2696_s3 + $0xa8] sm:$0xff]  ;;  %v364_v38 = vld [vmem:[%s2696_s3 + $0xb8] sm:$0xff]  ;;  %v365_v41 = vld [vmem:[%s2696_s3 + $0xc0] sm:$0xff] }
  0xa0   : > { %1866 = vmatpush3.bf16.msra.mxu1 %v1865_v62  ;;  %v366_v40 = vld [vmem:[%s2696_s3 + $0xc8] sm:$0xff]  ;;  %v368_v42 = vld [vmem:[%s2696_s3 + $0xd8] sm:$0xff]  ;;  %v367_v43 = vld [vmem:[%s2696_s3 + $0xd0] sm:$0xff] }
  0xa1   : > { %1818 = vmatpush1.bf16.msra.mxu0 %v1817_v11  ;;  %v466_v11 = vld [vmem:[%s2703_s8 + $0x2e8] sm:$0xff]  ;;  %1868 = vmatprep.subr.bf16.mxu1 %v1867_v1  ;;  %v369_v45 = vld [vmem:[%s2696_s3 + $0xe0] sm:$0xff]  ;;  %v372_v46 = vld [vmem:[%s2696_s3 + $0xf8] sm:$0xff]  ;;  %s1515_s8 = sshll.u32 %s3313_s30, 5 }
  0xa2   : > { %1820 = vmatprep.subr.bf16.mxu0 %v1819_v15  ;;  %v1841_v15 = vpack.c.bf16 %v466_v11, %v463_v8  ;;  %v370_v44 = vld [vmem:[%s2696_s3 + $0xe8] sm:$0xff]  ;;  %s1332_s7 = sadd.s32 %s1517_s12, %s1515_s8  ;;  %s2230_s12 = sshll.u32 %s2416_s4, 4  ;;  %s2231_s12 = int_to_ptr.vmem [resolvable:$false] %s2230_s12 }
  0xa3   : > { %s1519_s21 = sshll.u32 %s1332_s7, 7  ;;  %s2232_s7 = scalar_lea.vmem %s2231_s12, 4096 }
  0xa4   : > { %1870 = vmatpush3.bf16.msra.mxu1 %v1869_v9  ;;  %p2233_p8 = scmp.lt.s32.totalorder %s3127_s9, %s2231_s12 }
  0xa5   : > { %1822 = vmatpush1.bf16.msra.mxu0 %v1821_v23  ;;  %1872 = vmatprep.subr.bf16.mxu1 %v1871_v12  ;;  %v347_v23 = vld [vmem:[%s2696_s3 + $0x30] sm:$0xff] }
  0xa6   : > { %1824 = vmatprep.subr.bf16.mxu0 %v1823_v27  ;;  %v351_v27 = vld [vmem:[%s2696_s3 + $0x50] sm:$0xff] }
  0xa8   : > { %1874 = vmatpush3.bf16.msra.mxu1 %v1873_v16 }
  0xa9   : > { %1826 = vmatpush1.bf16.msra.mxu0 %v1825_v35  ;;  %v359_v35 = vld [vmem:[%s2696_s3 + $0x90] sm:$0xff] }
  0xaa   : > { %1828 = vmatprep.subr.bf16.mxu0 %v1827_v39  ;;  %v363_v39 = vld [vmem:[%s2696_s3 + $0xb0] sm:$0xff] }
  0xab   : > { %712 = vmatmul.mubr.f32.vlgmr.msra.gmra.mrb[0].mxu1 %v341_v17 }
  0xac   : > { %716 = vmatprep.mubr.f32.mxu1 %v344_v18 }
  0xad   : > { %1830 = vmatpush1.bf16.msra.mxu0 %v1829_v47  ;;  %v371_v47 = vld [vmem:[%s2696_s3 + $0xf0] sm:$0xff]  ;;  %s336_s3 = scalar_lea.vmem %s3314_s16, %s335_s10  ;;  %s1303_s16 = scalar_lea.sflag [#allocation9], %s3078_s28 }
  0xae   : > { %1832 = vmatprep.subr.bf16.mxu0 %v1831_v51  ;;  %v469_v51 = vld [vmem:[%s340_s29] sm:$0x7]  ;;  %s3315_s29 = sld [smem:[#allocation23_spill]] }
  0xaf   : > { %717 = vmatmul.mubr.f32.gmra.mrb[2].mxu1 %v343_v19  ;;  %v2842_v52 = vrot.slane %v469_v51, %v473_v50  ;;  %v2845_v60 = vrot.slane %v469_v51, %v477_v53  ;;  %v2847_v61 = vrot.slane %v469_v51, %v481_v54 }
  0xb0   : > { %721 = vmatprep.mubr.f32.mxu1 %v346_v20 }
  0xb1   : > { %1834 = vmatpush1.bf16.msra.mxu0 %v1833_v59 }
  0xb2   : > { %1836 = vmatprep.subr.bf16.mxu0 %v1835_v63 }
  0xb3   : > { %722 = vmatmul.mubr.f32.gmra.mrb[4].mxu1 %v345_v21 }
  0xb4   : > { %726 = vmatprep.mubr.f32.mxu1 %v348_v22  ;;  %s3316_s10 = smov %s3315_s29  ;;  %s3124_s11 = scalar_lea.hbm %s3315_s29, %s1519_s21 }
  0xb5   : > { %1838 = vmatpush1.bf16.msra.mxu0 %v1837_v7 }
  0xb6   : > { %1840 = vmatprep.subr.bf16.mxu0 %v1839_v10 }
  0xb7   : > { %727 = vmatmul.mubr.f32.gmra.mrb[6].mxu1 %v347_v23 }
  0xb8   : > { %731 = vmatprep.mubr.f32.mxu1 %v350_v24 }
  0xb9   : > { %1842 = vmatpush1.bf16.msra.mxu0 %v1841_v15 }
  0xbb   : > { %732 = vmatmul.mubr.f32.gmra.mrb[8].mxu1 %v349_v25 }
  0xbc   : > { %551 = vmatmul.mubr.f32.vlgmr.msra.gmra.mrb[0].mxu0 %v341_v17  ;;  %736 = vmatprep.mubr.f32.mxu1 %v352_v26 }
  0xbd   : > { %556 = vmatprep.mubr.f32.mxu0 %v344_v18 }
  0xbf   : > { %737 = vmatmul.mubr.f32.gmra.mrb[10].mxu1 %v351_v27 }
  0xc0   : > { %557 = vmatmul.mubr.f32.gmra.mrb[2].mxu0 %v343_v19  ;;  %741 = vmatprep.mubr.f32.mxu1 %v354_v28 }
  0xc1   : > { %562 = vmatprep.mubr.f32.mxu0 %v346_v20 }
  0xc3   : > { %742 = vmatmul.mubr.f32.gmra.mrb[12].mxu1 %v353_v29 }
  0xc4   : > { %563 = vmatmul.mubr.f32.gmra.mrb[4].mxu0 %v345_v21  ;;  %746 = vmatprep.mubr.f32.mxu1 %v356_v30 }
  0xc5   : > { %568 = vmatprep.mubr.f32.mxu0 %v348_v22 }
  0xc7   : > { %747 = vmatmul.mubr.f32.gmra.mrb[14].mxu1 %v355_v31 }
  0xc8   : > { %569 = vmatmul.mubr.f32.gmra.mrb[6].mxu0 %v347_v23  ;;  %751 = vmatprep.mubr.f32.mxu1 %v358_v32 }
  0xc9   : > { %574 = vmatprep.mubr.f32.mxu0 %v350_v24 }
  0xcb   : > { %752 = vmatmul.mubr.f32.gmra.mrb[16].mxu1 %v357_v33 }
  0xcc   : > { %575 = vmatmul.mubr.f32.gmra.mrb[8].mxu0 %v349_v25  ;;  %756 = vmatprep.mubr.f32.mxu1 %v360_v34 }
  0xcd   : > { %580 = vmatprep.mubr.f32.mxu0 %v352_v26 }
  0xcf   : > { %757 = vmatmul.mubr.f32.gmra.mrb[18].mxu1 %v359_v35 }
  0xd0   : > { %581 = vmatmul.mubr.f32.gmra.mrb[10].mxu0 %v351_v27  ;;  %761 = vmatprep.mubr.f32.mxu1 %v362_v36 }
  0xd1   : > { %586 = vmatprep.mubr.f32.mxu0 %v354_v28 }
  0xd3   : > { %762 = vmatmul.mubr.f32.gmra.mrb[20].mxu1 %v361_v37 }
  0xd4   : > { %587 = vmatmul.mubr.f32.gmra.mrb[12].mxu0 %v353_v29  ;;  %766 = vmatprep.mubr.f32.mxu1 %v364_v38 }
  0xd5   : > { %592 = vmatprep.mubr.f32.mxu0 %v356_v30 }
  0xd7   : > { %767 = vmatmul.mubr.f32.gmra.mrb[22].mxu1 %v363_v39 }
  0xd8   : > { %593 = vmatmul.mubr.f32.gmra.mrb[14].mxu0 %v355_v31  ;;  %771 = vmatprep.mubr.f32.mxu1 %v366_v40 }
  0xd9   : > { %598 = vmatprep.mubr.f32.mxu0 %v358_v32 }
  0xdb   : > { %772 = vmatmul.mubr.f32.gmra.mrb[24].mxu1 %v365_v41 }
  0xdc   : > { %599 = vmatmul.mubr.f32.gmra.mrb[16].mxu0 %v357_v33  ;;  %776 = vmatprep.mubr.f32.mxu1 %v368_v42 }
  0xdd   : > { %604 = vmatprep.mubr.f32.mxu0 %v360_v34 }
  0xdf   : > { %777 = vmatmul.mubr.f32.gmra.mrb[26].mxu1 %v367_v43 }
  0xe0   : > { %605 = vmatmul.mubr.f32.gmra.mrb[18].mxu0 %v359_v35  ;;  %781 = vmatprep.mubr.f32.mxu1 %v370_v44 }
  0xe1   : > { %610 = vmatprep.mubr.f32.mxu0 %v362_v36 }
  0xe3   : > { %782 = vmatmul.mubr.f32.gmra.mrb[28].mxu1 %v369_v45 }
  0xe4   : > { %611 = vmatmul.mubr.f32.gmra.mrb[20].mxu0 %v361_v37  ;;  %786 = vmatprep.mubr.f32.mxu1 %v372_v46 }
  0xe5   : > { %616 = vmatprep.mubr.f32.mxu0 %v364_v38 }
  0xe7   : > { %787 = vmatmul.mubr.f32.gmra.mrb[30].mxu1 %v371_v47 }
  0xe8   : > { %617 = vmatmul.mubr.f32.gmra.mrb[22].mxu0 %v363_v39 }
  0xe9   : > { %622 = vmatprep.mubr.f32.mxu0 %v366_v40 }
  0xec   : > { %623 = vmatmul.mubr.f32.gmra.mrb[24].mxu0 %v365_v41 }
  0xed   : > { %628 = vmatprep.mubr.f32.mxu0 %v368_v42 }
  0xf0   : > { %629 = vmatmul.mubr.f32.gmra.mrb[26].mxu0 %v367_v43 }
  0xf1   : > { %634 = vmatprep.mubr.f32.mxu0 %v370_v44 }
  0xf4   : > { %635 = vmatmul.mubr.f32.gmra.mrb[28].mxu0 %v369_v45 }
  0xf5   : > { %640 = vmatprep.mubr.f32.mxu0 %v372_v46 }
  0xf8   : > { %641 = vmatmul.mubr.f32.gmra.mrb[30].mxu0 %v371_v47 }
 0x17e   : > { %v1555_v56 = vpop.f32.mrb[0].mxu1 }
 0x17f   : > { %v1556_v59 = vpop.f32.mrb[1].mxu1 }
 0x180   : > { %v1557_v62 = vadd.f32 %v1556_v59, %v1555_v56 }
 0x182   : > { %v1558_v0 = vpop.f32.mrb[2].mxu1  ;;  %v714_v6 = vadd.f32 %v1557_v62, %v2847_v61 }
 0x183   : > { %v1559_v3 = vpop.f32.mrb[3].mxu1 }
 0x184   : > { %v1560_v7 = vadd.f32 %v1559_v3, %v1558_v0 }
 0x186   : > { %v719_v10 = vadd.f32 %v1560_v7, %v2847_v61  ;;  %v1561_v11 = vpop.f32.mrb[4].mxu1 }
 0x187   : > { %v1562_v14 = vpop.f32.mrb[5].mxu1 }
 0x188   : > { %v2859_v15 = vpack.c.bf16 %v719_v10, %v714_v6  ;;  %v1563_v16 = vadd.f32 %v1562_v14, %v1561_v11 }
 0x18a   : > { %v1564_v18 = vpop.f32.mrb[6].mxu1  ;;  %1908 = vmatprep.subr.bf16.mxu0 %v2859_v15  ;;  %v724_v24 = vadd.f32 %v1563_v16, %v2847_v61 }
 0x18b   : > { %v1565_v21 = vpop.f32.mrb[7].mxu1  ;;  %1910 = vmatpush3.bf16.msra.mxu0 %v2859_v15 }
 0x18c   : > { %v1566_v25 = vadd.f32 %v1565_v21, %v1564_v18 }
 0x18e   : > { %v729_v28 = vadd.f32 %v1566_v25, %v2847_v61  ;;  %v1567_v29 = vpop.f32.mrb[8].mxu1 }
 0x18f   : > { %v552_v55 = vpop.f32.mrb[0].mxu0  ;;  %v1568_v32 = vpop.f32.mrb[9].mxu1 }
 0x190   : > { %v553_v57 = vadd.f32 %v552_v55, %v2842_v52  ;;  %v554_v58 = vpop.f32.mrb[1].mxu0  ;;  %v2873_v33 = vpack.c.bf16 %v729_v28, %v724_v24  ;;  %v1569_v34 = vadd.f32 %v1568_v32, %v1567_v29 }
 0x191   : > { %v555_v4 = vadd.f32 %v554_v58, %v2845_v60 }
 0x192   : > { %1699 = vmatprep.mubr.f32.mxu1 %v553_v57  ;;  %v1570_v36 = vpop.f32.mrb[10].mxu1  ;;  %1912 = vmatprep.subr.bf16.mxu0 %v2873_v33  ;;  %v734_v42 = vadd.f32 %v1569_v34, %v2847_v61 }
 0x193   : > { %v558_v63 = vpop.f32.mrb[2].mxu0  ;;  %v1571_v39 = vpop.f32.mrb[11].mxu1  ;;  %1914 = vmatpush3.bf16.msra.mxu0 %v2873_v33 }
 0x194   : > { %v2850_v1 = vadd.f32 %v558_v63, %v2842_v52  ;;  %v560_v2 = vpop.f32.mrb[3].mxu0  ;;  %v1572_v43 = vadd.f32 %v1571_v39, %v1570_v36 }
 0x195   : > { %v561_v5 = vadd.f32 %v560_v2, %v2845_v60 }
 0x196   : > { %v739_v46 = vadd.f32 %v1572_v43, %v2847_v61  ;;  %v1573_v47 = vpop.f32.mrb[12].mxu1 }
 0x197   : > { %v1875_v8 = vpack.c.bf16 %v561_v5, %v555_v4  ;;  %v564_v9 = vpop.f32.mrb[4].mxu0  ;;  %v1574_v50 = vpop.f32.mrb[13].mxu1 }
 0x198   : > { %v2857_v12 = vadd.f32 %v564_v9, %v2842_v52  ;;  %v566_v13 = vpop.f32.mrb[5].mxu0  ;;  %v2887_v51 = vpack.c.bf16 %v739_v46, %v734_v42  ;;  %v1575_v53 = vadd.f32 %v1574_v50, %v1573_v47 }
 0x199   : > { %1876 = vmatprep.subr.bf16.mxu1 %v1875_v8  ;;  %v567_v22 = vadd.f32 %v566_v13, %v2845_v60 }
 0x19a   : > { %1878 = vmatpush3.bf16.xpose.msra.mxu1 %v1875_v8  ;;  %v1576_v55 = vpop.f32.mrb[14].mxu1  ;;  %1916 = vmatprep.subr.bf16.mxu0 %v2887_v51  ;;  %v744_v63 = vadd.f32 %v1575_v53, %v2847_v61 }
 0x19b   : > { %v570_v17 = vpop.f32.mrb[6].mxu0  ;;  %v1577_v58 = vpop.f32.mrb[15].mxu1  ;;  %1918 = vmatpush3.bf16.msra.mxu0 %v2887_v51 }
 0x19c   : > { %v2863_v19 = vadd.f32 %v570_v17, %v2842_v52  ;;  %v572_v20 = vpop.f32.mrb[7].mxu0  ;;  %v1578_v0 = vadd.f32 %v1577_v58, %v1576_v55 }
 0x19d   : > { %v573_v23 = vadd.f32 %v572_v20, %v2845_v60 }
 0x19e   : > { %v749_v4 = vadd.f32 %v1578_v0, %v2847_v61  ;;  %v1579_v5 = vpop.f32.mrb[16].mxu1 }
 0x19f   : > { %v1879_v26 = vpack.c.bf16 %v573_v23, %v567_v22  ;;  %v576_v27 = vpop.f32.mrb[8].mxu0  ;;  %v1580_v8 = vpop.f32.mrb[17].mxu1 }
 0x1a0   : > { %v2871_v30 = vadd.f32 %v576_v27, %v2842_v52  ;;  %v578_v31 = vpop.f32.mrb[9].mxu0  ;;  %v2901_v9 = vpack.c.bf16 %v749_v4, %v744_v63  ;;  %v1581_v10 = vadd.f32 %v1580_v8, %v1579_v5 }
 0x1a1   : > { %1880 = vmatprep.subr.bf16.mxu1 %v1879_v26  ;;  %v579_v40 = vadd.f32 %v578_v31, %v2845_v60 }
 0x1a2   : > { %1882 = vmatpush3.bf16.xpose.msra.mxu1 %v1879_v26  ;;  %v1582_v13 = vpop.f32.mrb[18].mxu1  ;;  %1920 = vmatprep.subr.bf16.mxu0 %v2901_v9  ;;  %v754_v21 = vadd.f32 %v1581_v10, %v2847_v61 }
 0x1a3   : > { %v582_v35 = vpop.f32.mrb[10].mxu0  ;;  %v1583_v17 = vpop.f32.mrb[19].mxu1  ;;  %1922 = vmatpush3.bf16.msra.mxu0 %v2901_v9 }
 0x1a4   : > { %v2877_v37 = vadd.f32 %v582_v35, %v2842_v52  ;;  %v584_v38 = vpop.f32.mrb[11].mxu0  ;;  %v1584_v22 = vadd.f32 %v1583_v17, %v1582_v13 }
 0x1a5   : > { %v585_v41 = vadd.f32 %v584_v38, %v2845_v60 }
 0x1a6   : > { %v759_v25 = vadd.f32 %v1584_v22, %v2847_v61  ;;  %v1585_v26 = vpop.f32.mrb[20].mxu1 }
 0x1a7   : > { %v1883_v44 = vpack.c.bf16 %v585_v41, %v579_v40  ;;  %v588_v45 = vpop.f32.mrb[12].mxu0  ;;  %v1586_v29 = vpop.f32.mrb[21].mxu1 }
 0x1a8   : > { %v2885_v48 = vadd.f32 %v588_v45, %v2842_v52  ;;  %v590_v49 = vpop.f32.mrb[13].mxu0  ;;  %v2915_v31 = vpack.c.bf16 %v759_v25, %v754_v21  ;;  %v1587_v32 = vadd.f32 %v1586_v29, %v1585_v26 }
 0x1a9   : > { %1884 = vmatprep.subr.bf16.mxu1 %v1883_v44  ;;  %v591_v59 = vadd.f32 %v590_v49, %v2845_v60 }
 0x1aa   : > { %1886 = vmatpush3.bf16.xpose.msra.mxu1 %v1883_v44  ;;  %v1588_v35 = vpop.f32.mrb[22].mxu1  ;;  %1924 = vmatprep.subr.bf16.mxu0 %v2915_v31  ;;  %v764_v42 = vadd.f32 %v1587_v32, %v2847_v61 }
 0x1ab   : > { %v594_v54 = vpop.f32.mrb[14].mxu0  ;;  %v1589_v39 = vpop.f32.mrb[23].mxu1  ;;  %1926 = vmatpush3.bf16.msra.mxu0 %v2915_v31 }
 0x1ac   : > { %v2891_v56 = vadd.f32 %v594_v54, %v2842_v52  ;;  %v596_v57 = vpop.f32.mrb[15].mxu0  ;;  %v1590_v43 = vadd.f32 %v1589_v39, %v1588_v35 }
 0x1ad   : > { %v597_v62 = vadd.f32 %v596_v57, %v2845_v60 }
 0x1ae   : > { %v769_v46 = vadd.f32 %v1590_v43, %v2847_v61  ;;  %v1591_v47 = vpop.f32.mrb[24].mxu1 }
 0x1af   : > { %v1887_v2 = vpack.c.bf16 %v597_v62, %v591_v59  ;;  %v600_v3 = vpop.f32.mrb[16].mxu0  ;;  %v1592_v53 = vpop.f32.mrb[25].mxu1 }
 0x1b0   : > { %v2899_v6 = vadd.f32 %v600_v3, %v2842_v52  ;;  %v602_v7 = vpop.f32.mrb[17].mxu0  ;;  %v2929_v54 = vpack.c.bf16 %v769_v46, %v764_v42  ;;  %v1593_v55 = vadd.f32 %v1592_v53, %v1591_v47 }
 0x1b1   : > { %1888 = vmatprep.subr.bf16.mxu1 %v1887_v2  ;;  %v603_v18 = vadd.f32 %v602_v7, %v2845_v60 }
 0x1b2   : > { %1890 = vmatpush3.bf16.xpose.msra.mxu1 %v1887_v2  ;;  %v1594_v58 = vpop.f32.mrb[26].mxu1  ;;  %1928 = vmatprep.subr.bf16.mxu0 %v2929_v54  ;;  %v774_v3 = vadd.f32 %v1593_v55, %v2847_v61 }
 0x1b3   : > { %v606_v11 = vpop.f32.mrb[18].mxu0  ;;  %v1595_v63 = vpop.f32.mrb[27].mxu1  ;;  %1930 = vmatpush3.bf16.msra.mxu0 %v2929_v54 }
 0x1b4   : > { %v2905_v14 = vadd.f32 %v606_v11, %v2842_v52  ;;  %v608_v16 = vpop.f32.mrb[19].mxu0  ;;  %v1596_v4 = vadd.f32 %v1595_v63, %v1594_v58 }
 0x1b5   : > { %v609_v20 = vadd.f32 %v608_v16, %v2845_v60 }
 0x1b6   : > { %v779_v8 = vadd.f32 %v1596_v4, %v2847_v61  ;;  %v1597_v10 = vpop.f32.mrb[28].mxu1 }
 0x1b7   : > { %v1891_v23 = vpack.c.bf16 %v609_v20, %v603_v18  ;;  %v612_v24 = vpop.f32.mrb[20].mxu0  ;;  %v1598_v16 = vpop.f32.mrb[29].mxu1 }
 0x1b8   : > { %v2913_v27 = vadd.f32 %v612_v24, %v2842_v52  ;;  %v614_v28 = vpop.f32.mrb[21].mxu0  ;;  %v1931_v17 = vpack.c.bf16 %v779_v8, %v774_v3  ;;  %v1599_v18 = vadd.f32 %v1598_v16, %v1597_v10 }
 0x1b9   : > { %1892 = vmatprep.subr.bf16.mxu1 %v1891_v23  ;;  %v615_v40 = vadd.f32 %v614_v28, %v2845_v60 }
 0x1ba   : > { %1894 = vmatpush3.bf16.xpose.msra.mxu1 %v1891_v23  ;;  %v1600_v21 = vpop.f32.mrb[30].mxu1  ;;  %1932 = vmatprep.subr.bf16.mxu0 %v1931_v17  ;;  %v784_v28 = vadd.f32 %v1599_v18, %v2847_v61 }
 0x1bb   : > { %v618_v34 = vpop.f32.mrb[22].mxu0  ;;  %v1601_v24 = vpop.f32.mrb[31].mxu1  ;;  %1934 = vmatpush3.bf16.msra.mxu0 %v1931_v17 }
 0x1bc   : > { %v2919_v36 = vadd.f32 %v618_v34, %v2842_v52  ;;  %v620_v38 = vpop.f32.mrb[23].mxu0  ;;  %v1602_v29 = vadd.f32 %v1601_v24, %v1600_v21 }
 0x1bd   : > { %v621_v41 = vadd.f32 %v620_v38, %v2845_v60 }
 0x1be   : > { %v789_v34 = vadd.f32 %v1602_v29, %v2847_v61 }
 0x1bf   : > { %v1895_v44 = vpack.c.bf16 %v621_v41, %v615_v40  ;;  %v624_v45 = vpop.f32.mrb[24].mxu0 }
 0x1c0   : > { %v2927_v49 = vadd.f32 %v624_v45, %v2842_v52  ;;  %v626_v50 = vpop.f32.mrb[25].mxu0  ;;  %v1935_v35 = vpack.c.bf16 %v789_v34, %v784_v28 }
 0x1c1   : > { %1896 = vmatprep.subr.bf16.mxu1 %v1895_v44  ;;  %v627_v0 = vadd.f32 %v626_v50, %v2845_v60 }
 0x1c2   : > { %1898 = vmatpush3.bf16.xpose.msra.mxu1 %v1895_v44  ;;  %1936 = vmatprep.subr.bf16.mxu0 %v1935_v35 }
 0x1c3   : > { %v630_v57 = vpop.f32.mrb[26].mxu0  ;;  %1938 = vmatpush3.bf16.msra.mxu0 %v1935_v35 }
 0x1c4   : > { %v631_v59 = vadd.f32 %v630_v57, %v2842_v52  ;;  %v632_v62 = vpop.f32.mrb[27].mxu0 }
 0x1c5   : > { %v633_v2 = vadd.f32 %v632_v62, %v2845_v60 }
 0x1c7   : > { %v1899_v5 = vpack.c.bf16 %v633_v2, %v627_v0  ;;  %v636_v7 = vpop.f32.mrb[28].mxu0 }
 0x1c8   : > { %v637_v11 = vadd.f32 %v636_v7, %v2842_v52  ;;  %v638_v13 = vpop.f32.mrb[29].mxu0 }
 0x1c9   : > { %1900 = vmatprep.subr.bf16.mxu1 %v1899_v5  ;;  %v639_v25 = vadd.f32 %v638_v13, %v2845_v60 }
 0x1ca   : > { %1902 = vmatpush3.bf16.xpose.msra.mxu1 %v1899_v5 }
 0x1cb   : > { %v642_v20 = vpop.f32.mrb[30].mxu0 }
 0x1cc   : > { %v643_v22 = vadd.f32 %v642_v20, %v2842_v52  ;;  %v644_v23 = vpop.f32.mrb[31].mxu0 }
 0x1cd   : > { %v645_v26 = vadd.f32 %v644_v23, %v2845_v60  ;;  %v1512_v60 = vld [vmem:[%s336_s3] ss:$0 sm:$0xff]  ;;  %s2226_s3 = scalar_lea.vmem %s3127_s9, 2048 }
 0x1ce   : > { %p2227_p9 = scmp.ne.s32.totalorder %s3127_s9, %s2226_s3  ;;  %p2234_p5 = scmp.lt.s32.totalorder %s2232_s7, %s2226_s3 }
 0x1cf   : > { %v1903_v32 = vpack.c.bf16 %v645_v26, %v639_v25 }
 0x1d0   : > { %p2228_p2 = pnand %p2227_p9, %p3317_p11  ;;  %p2235_p0 = por %p2234_p5, %p2233_p8 }
 0x1d1   : > { %1904 = vmatprep.subr.bf16.mxu1 %v1903_v32 }
 0x1d2   : > { %1906 = vmatpush3.bf16.xpose.msra.mxu1 %v1903_v32  ;;  %p2229_p10 = pneg %p2228_p2 }
 0x1d3   : > { %1939 = vmatprep.subr.bf16.mxu1 %v2859_v15 }
 0x1d4   : > { %p2236_p4 = pnand %p2235_p0, %p2229_p10 }
 0x1d9   : > { %1700 = vmatmul.mubr.f32.vlgmr.msra.gmra.mrb[32].mxu1 %v2850_v1 }
 0x1da   : > { %1702 = vmatprep.mubr.f32.mxu1 %v2857_v12  ;;  %1947 = vmatpush3.bf16.msra.mxu1 %v2859_v15 }
 0x1db   : > { %1940 = vmatprep.subr.bf16.mxu1 %v2873_v33 }
 0x1dd   : > { %1703 = vmatmul.mubr.f32.gmra.mrb[34].mxu1 %v2863_v19 }
 0x1de   : > { %1705 = vmatprep.mubr.f32.mxu1 %v2871_v30  ;;  %1948 = vmatpush3.bf16.msra.mxu1 %v2873_v33 }
 0x1df   : > { %1941 = vmatprep.subr.bf16.mxu1 %v2887_v51 }
 0x1e1   : > { %1706 = vmatmul.mubr.f32.gmra.mrb[36].mxu1 %v2877_v37 }
 0x1e2   : > { %1708 = vmatprep.mubr.f32.mxu1 %v2885_v48  ;;  %1949 = vmatpush3.bf16.msra.mxu1 %v2887_v51 }
 0x1e3   : > { %1942 = vmatprep.subr.bf16.mxu1 %v2901_v9 }
 0x1e5   : > { %1709 = vmatmul.mubr.f32.gmra.mrb[38].mxu1 %v2891_v56 }
 0x1e6   : > { %1711 = vmatprep.mubr.f32.mxu1 %v2899_v6  ;;  %1950 = vmatpush3.bf16.msra.mxu1 %v2901_v9 }
 0x1e7   : > { %1943 = vmatprep.subr.bf16.mxu1 %v2915_v31 }
 0x1e9   : > { %1712 = vmatmul.mubr.f32.gmra.mrb[40].mxu1 %v2905_v14 }
 0x1ea   : > { %1714 = vmatprep.mubr.f32.mxu1 %v2913_v27  ;;  %1951 = vmatpush3.bf16.msra.mxu1 %v2915_v31 }
 0x1eb   : > { %1944 = vmatprep.subr.bf16.mxu1 %v2929_v54 }
 0x1ed   : > { %1715 = vmatmul.mubr.f32.gmra.mrb[42].mxu1 %v2919_v36 }
 0x1ee   : > { %1717 = vmatprep.mubr.f32.mxu1 %v2927_v49  ;;  %1952 = vmatpush3.bf16.msra.mxu1 %v2929_v54 }
 0x1ef   : > { %1945 = vmatprep.subr.bf16.mxu1 %v1931_v17 }
 0x1f1   : > { %1718 = vmatmul.mubr.f32.gmra.mrb[44].mxu1 %v631_v59 }
 0x1f2   : > { %1720 = vmatprep.mubr.f32.mxu1 %v637_v11  ;;  %1953 = vmatpush3.bf16.msra.mxu1 %v1931_v17 }
 0x1f3   : > { %1946 = vmatprep.subr.bf16.mxu1 %v1935_v35 }
 0x1f5   : > { %1721 = vmatmul.mubr.f32.gmra.mrb[46].mxu1 %v643_v22 }
 0x1f6   : > { %1954 = vmatpush3.bf16.msra.mxu1 %v1935_v35 }
 0x2ac   : > { %v1701_v52 = vpop.f32.mrb[32].mxu1 }
 0x2ad   : > { %v938_v61 = vmul.f32 0.088388346, %v1701_v52  ;;  %v858_v1 = vpop.f32.mrb[33].mxu1 }
 0x2ae   : > { %v937_v12 = vmul.f32 0.088388346, %v858_v1 }
 0x2af   : > { %v2973_v15 = vadd.f32 %v1512_v60, %v938_v61 }
 0x2b0   : > { %v1704_v19 = vpop.f32.mrb[34].mxu1  ;;  %v2975_v30 = vadd.f32 %v1512_v60, %v937_v12 }
 0x2b1   : > { %v940_v33 = vmul.f32 0.088388346, %v1704_v19  ;;  %978 = vmax.xlane.f32.xlu1 %v2973_v15  ;;  %v868_v37 = vpop.f32.mrb[35].mxu1 }
 0x2b2   : > { %976 = vmax.xlane.f32.xlu0 %v2975_v30  ;;  %v939_v51 = vmul.f32 0.088388346, %v868_v37 }
 0x2b3   : > { %v2979_v48 = vadd.f32 %v1512_v60, %v940_v33 }
 0x2b4   : > { %v1707_v56 = vpop.f32.mrb[36].mxu1  ;;  %v962_v14 = vadd.f32 %v1512_v60, %v939_v51 }
 0x2b5   : > { %v878_v6 = vpop.f32.mrb[37].mxu1  ;;  %v942_v49 = vmul.f32 0.088388346, %v1707_v56 }
 0x2b6   : > { %982 = vmax.xlane.f32.xlu0 %v2979_v48  ;;  %v941_v41 = vmul.f32 0.088388346, %v878_v6 }
 0x2b7   : > { %v965_v62 = vadd.f32 %v1512_v60, %v942_v49 }
 0x2b8   : > { %v1710_v9 = vpop.f32.mrb[38].mxu1  ;;  %v2990_v53 = vadd.f32 %v1512_v60, %v941_v41 }
 0x2b9   : > { %v888_v27 = vpop.f32.mrb[39].mxu1  ;;  %v944_v3 = vmul.f32 0.088388346, %v1710_v9 }
 0x2ba   : > { %980 = vmax.xlane.f32.xlu0 %v962_v14  ;;  %v943_v58 = vmul.f32 0.088388346, %v888_v27 }
 0x2bb   : > { %v3005_v8 = vadd.f32 %v1512_v60, %v944_v3 }
 0x2bc   : > { %v1713_v31 = vpop.f32.mrb[40].mxu1  ;;  %v2999_v4 = vadd.f32 %v1512_v60, %v943_v58 }
 0x2bd   : > { %v946_v36 = vmul.f32 0.088388346, %v1713_v31  ;;  %v898_v38 = vpop.f32.mrb[41].mxu1 }
 0x2be   : > { %v945_v39 = vmul.f32 0.088388346, %v898_v38 }
 0x2bf   : > { %v2982_v40 = vadd.f32 %v1512_v60, %v946_v36 }
 0x2c0   : > { %v1716_v42 = vpop.f32.mrb[42].mxu1  ;;  %v2984_v43 = vadd.f32 %v1512_v60, %v945_v39 }
 0x2c1   : > { %v948_v44 = vmul.f32 0.088388346, %v1716_v42  ;;  %994 = vmax.xlane.f32.xlu1 %v2982_v40  ;;  %v908_v45 = vpop.f32.mrb[43].mxu1 }
 0x2c2   : > { %992 = vmax.xlane.f32.xlu0 %v2984_v43  ;;  %v947_v46 = vmul.f32 0.088388346, %v908_v45 }
 0x2c3   : > { %v2988_v47 = vadd.f32 %v1512_v60, %v948_v44 }
 0x2c4   : > { %v1719_v50 = vpop.f32.mrb[44].mxu1  ;;  %v2994_v57 = vadd.f32 %v1512_v60, %v947_v46 }
 0x2c5   : > { %998 = vmax.xlane.f32.xlu1 %v2988_v47  ;;  %v918_v54 = vpop.f32.mrb[45].mxu1  ;;  %v950_v55 = vmul.f32 0.088388346, %v1719_v50 }
 0x2c6   : > { %984 = vmax.xlane.f32.xlu0 %v2990_v53  ;;  %v949_v0 = vmul.f32 0.088388346, %v918_v54 }
 0x2c7   : > { %v2997_v2 = vadd.f32 %v1512_v60, %v950_v55 }
 0x2c8   : > { %v1722_v59 = vpop.f32.mrb[46].mxu1  ;;  %v3003_v7 = vadd.f32 %v1512_v60, %v949_v0 }
 0x2c9   : > { %996 = vmax.xlane.f32.xlu1 %v2994_v57  ;;  %v928_v63 = vpop.f32.mrb[47].mxu1  ;;  %v952_v10 = vmul.f32 0.088388346, %v1722_v59 }
 0x2ca   : > { %986 = vmax.xlane.f32.xlu0 %v965_v62  ;;  %v951_v5 = vmul.f32 0.088388346, %v928_v63 }
 0x2cb   : > { %v3012_v13 = vadd.f32 %v1512_v60, %v952_v10 }
 0x2cc   : > { %v3009_v11 = vadd.f32 %v1512_v60, %v951_v5 }
 0x2cd   : > { %1002 = vmax.xlane.f32.xlu1 %v2997_v2 }
 0x2ce   : > { %988 = vmax.xlane.f32.xlu0 %v2999_v4 }
 0x2d1   : > { %1000 = vmax.xlane.f32.xlu1 %v3003_v7 }
 0x2d2   : > { %990 = vmax.xlane.f32.xlu0 %v3005_v8 }
 0x2d5   : > { %1004 = vmax.xlane.f32.xlu1 %v3009_v11 }
 0x2d9   : > { %1006 = vmax.xlane.f32.xlu1 %v3012_v13 }
 0x33e   : > { %v979_v16 = vpop.xlane.xlu1 %978 }
 0x33f   : > { %v1009_v17 = vsub.f32 %v2973_v15, %v979_v16  ;;  %v977_v18 = vpop.xlane.xlu0 %976 }
 0x340   : > { %v1008_v20 = vsub.f32 %v2975_v30, %v977_v18 }
 0x341   : > { %v1026_v21 = vmul.f32 1.442695, %v1009_v17 }
 0x342   : > { %v1024_v22 = vmul.f32 1.442695, %v1008_v20 }
 0x343   : > { %2102 = vpow2.f32 %v1026_v21  ;;  %v983_v23 = vpop.xlane.xlu0 %982 }
 0x344   : > { %v1011_v24 = vsub.f32 %v2979_v48, %v983_v23  ;;  %2104 = vpow2.f32 %v1024_v22 }
 0x346   : > { %v1030_v25 = vmul.f32 1.442695, %v1011_v24 }
 0x347   : > { %v981_v26 = vpop.xlane.xlu0 %980 }
 0x348   : > { %v1010_v28 = vsub.f32 %v962_v14, %v981_v26  ;;  %2106 = vpow2.f32 %v1030_v25 }
 0x34a   : > { %v1028_v29 = vmul.f32 1.442695, %v1010_v28 }
 0x34c   : > { %2108 = vpow2.f32 %v1028_v29 }
 0x34d   : > { %v3018_v32 = vpop.eup %2102 }
 0x34e   : > { %v995_v34 = vpop.xlane.xlu1 %994  ;;  %1058 = vadd.xlane.f32.xlu0 %v3018_v32  ;;  %v3023_v61 = vpop.eup %2104 }
 0x34f   : > { %v1017_v35 = vsub.f32 %v2982_v40, %v995_v34  ;;  %v993_v52 = vpop.xlane.xlu0 %992 }
 0x350   : > { %v1016_v60 = vsub.f32 %v2984_v43, %v993_v52 }
 0x351   : > { %v1042_v1 = vmul.f32 1.442695, %v1017_v35 }
 0x352   : > { %1056 = vadd.xlane.f32.xlu0 %v3023_v61  ;;  %v999_v12 = vpop.xlane.xlu1 %998  ;;  %v1040_v15 = vmul.f32 1.442695, %v1016_v60  ;;  %v3027_v33 = vpop.eup %2106 }
 0x353   : > { %2110 = vpow2.f32 %v1042_v1  ;;  %v1019_v19 = vsub.f32 %v2988_v47, %v999_v12  ;;  %v985_v30 = vpop.xlane.xlu0 %984 }
 0x354   : > { %2112 = vpow2.f32 %v1040_v15  ;;  %v1012_v6 = vsub.f32 %v2990_v53, %v985_v30 }
 0x355   : > { %v1046_v48 = vmul.f32 1.442695, %v1019_v19 }
 0x356   : > { %1062 = vadd.xlane.f32.xlu0 %v3027_v33  ;;  %v997_v37 = vpop.xlane.xlu1 %996  ;;  %v3032_v14 = vpop.eup %2108  ;;  %v1032_v40 = vmul.f32 1.442695, %v1012_v6 }
 0x357   : > { %v1018_v51 = vsub.f32 %v2994_v57, %v997_v37  ;;  %v987_v56 = vpop.xlane.xlu0 %986  ;;  %2114 = vpow2.f32 %v1046_v48 }
 0x358   : > { %v1013_v9 = vsub.f32 %v965_v62, %v987_v56 }
 0x359   : > { %v1044_v36 = vmul.f32 1.442695, %v1018_v51 }
 0x35a   : > { %v1034_v27 = vmul.f32 1.442695, %v1013_v9  ;;  %1060 = vadd.xlane.f32.xlu0 %v3032_v14  ;;  %v1003_v31 = vpop.xlane.xlu1 %1002 }
 0x35b   : > { %v1021_v38 = vsub.f32 %v2997_v2, %v1003_v31  ;;  %v989_v39 = vpop.xlane.xlu0 %988 }
 0x35c   : > { %2116 = vpow2.f32 %v1034_v27  ;;  %v1014_v41 = vsub.f32 %v2999_v4, %v989_v39 }
 0x35d   : > { %v3037_v42 = vpop.eup %2110  ;;  %2118 = vpow2.f32 %v1044_v36  ;;  %v1050_v44 = vmul.f32 1.442695, %v1021_v38 }
 0x35e   : > { %v1001_v43 = vpop.xlane.xlu1 %1000  ;;  %1074 = vadd.xlane.f32.xlu1 %v3037_v42  ;;  %2120 = vpow2.f32 %v1032_v40  ;;  %v1036_v47 = vmul.f32 1.442695, %v1014_v41  ;;  %v3042_v50 = vpop.eup %2112 }
 0x35f   : > { %v1020_v45 = vsub.f32 %v3003_v7, %v1001_v43  ;;  %v991_v46 = vpop.xlane.xlu0 %990  ;;  %2122 = vpow2.f32 %v1050_v44 }
 0x360   : > { %v1015_v49 = vsub.f32 %v3005_v8, %v991_v46  ;;  %2124 = vpow2.f32 %v1036_v47 }
 0x361   : > { %v1048_v54 = vmul.f32 1.442695, %v1020_v45  ;;  %v3046_v58 = vpop.eup %2114 }
 0x362   : > { %1072 = vadd.xlane.f32.xlu1 %v3042_v50  ;;  %v1005_v53 = vpop.xlane.xlu1 %1004  ;;  %v1038_v57 = vmul.f32 1.442695, %v1015_v49 }
 0x363   : > { %v1022_v55 = vsub.f32 %v3009_v11, %v1005_v53  ;;  %2126 = vpow2.f32 %v1048_v54 }
 0x364   : > { %2128 = vpow2.f32 %v1038_v57 }
 0x365   : > { %v1052_v63 = vmul.f32 1.442695, %v1022_v55 }
 0x366   : > { %v3048_v59 = vpop.eup %2116  ;;  %1078 = vadd.xlane.f32.xlu1 %v3046_v58  ;;  %v1007_v62 = vpop.xlane.xlu1 %1006 }
 0x367   : > { %v1023_v0 = vsub.f32 %v3012_v13, %v1007_v62  ;;  %1066 = vadd.xlane.f32.xlu0 %v3048_v59  ;;  %v3053_v2 = vpop.eup %2118  ;;  %2130 = vpow2.f32 %v1052_v63 }
 0x368   : > { %v3055_v3 = vpop.eup %2120 }
 0x369   : > { %v1054_v4 = vmul.f32 1.442695, %v1023_v0  ;;  %v3059_v5 = vpop.eup %2122 }
 0x36a   : > { %1076 = vadd.xlane.f32.xlu1 %v3053_v2  ;;  %v3061_v7 = vpop.eup %2124 }
 0x36b   : > { %1064 = vadd.xlane.f32.xlu0 %v3055_v3  ;;  %2132 = vpow2.f32 %v1054_v4 }
 0x36d   : > { %v3065_v8 = vpop.eup %2126 }
 0x36e   : > { %1082 = vadd.xlane.f32.xlu1 %v3059_v5  ;;  %v3067_v10 = vpop.eup %2128 }
 0x36f   : > { %1068 = vadd.xlane.f32.xlu0 %v3061_v7 }
 0x371   : > { %v3071_v11 = vpop.eup %2130 }
 0x372   : > { %1080 = vadd.xlane.f32.xlu1 %v3065_v8 }
 0x373   : > { %1070 = vadd.xlane.f32.xlu0 %v3067_v10 }
 0x375   : > { %v3074_v13 = vpop.eup %2132 }
 0x376   : > { %1084 = vadd.xlane.f32.xlu1 %v3071_v11 }
 0x37a   : > { %1086 = vadd.xlane.f32.xlu1 %v3074_v13 }
 0x3db   : > { %v1059_v16 = vpop.xlane.xlu0 %1058 }
 0x3dc   : > { %2134 = vrcp.f32 %v1059_v16 }
 0x3df   : > { %v1057_v17 = vpop.xlane.xlu0 %1056 }
 0x3e0   : > { %2136 = vrcp.f32 %v1057_v17 }
 0x3e3   : > { %v1063_v18 = vpop.xlane.xlu0 %1062 }
 0x3e4   : > { %2138 = vrcp.f32 %v1063_v18 }
 0x3e6   : > { %v2135_v20 = vpop.eup %2134 }
 0x3e7   : > { %v1091_v21 = vmul.f32 %v2135_v20, %v3018_v32  ;;  %v1061_v22 = vpop.xlane.xlu0 %1060 }
 0x3e8   : > { %2140 = vrcp.f32 %v1061_v22 }
 0x3e9   : > { %1282 = vst [vmem:[%s3084_s0 + $0x8] sm:$0xff] %v1091_v21 }
 0x3ea   : > { %v2137_v23 = vpop.eup %2136 }
 0x3eb   : > { %v1075_v24 = vpop.xlane.xlu1 %1074  ;;  %v1089_v25 = vmul.f32 %v2137_v23, %v3023_v61 }
 0x3ec   : > { %2142 = vrcp.f32 %v1075_v24 }
 0x3ed   : > { %1755 = vmatprep.mubr.f32.mxu0 %v1089_v25  ;;  %1281 = vst [vmem:[%s3084_s0] sm:$0xff] %v1089_v25 }
 0x3ee   : > { %v2139_v26 = vpop.eup %2138  ;;  %1756 = vmatmul.mubr.f32.vlgmr.msra.gmra.mrb[32].mxu0 %v1091_v21 }
 0x3ef   : > { %v1073_v28 = vpop.xlane.xlu1 %1072  ;;  %v1095_v29 = vmul.f32 %v2139_v26, %v3027_v33 }
 0x3f0   : > { %2144 = vrcp.f32 %v1073_v28 }
 0x3f1   : > { %1284 = vst [vmem:[%s3084_s0 + $0x18] sm:$0xff] %v1095_v29 }
 0x3f2   : > { %v2141_v32 = vpop.eup %2140 }
 0x3f3   : > { %v1079_v34 = vpop.xlane.xlu1 %1078  ;;  %v1093_v35 = vmul.f32 %v2141_v32, %v3032_v14 }
 0x3f4   : > { %2146 = vrcp.f32 %v1079_v34  ;;  %v1067_v52 = vpop.xlane.xlu0 %1066 }
 0x3f5   : > { %2148 = vrcp.f32 %v1067_v52  ;;  %1758 = vmatprep.mubr.f32.mxu0 %v1093_v35  ;;  %1283 = vst [vmem:[%s3084_s0 + $0x10] sm:$0xff] %v1093_v35 }
 0x3f6   : > { %v2143_v60 = vpop.eup %2142  ;;  %1759 = vmatmul.mubr.f32.gmra.mrb[34].mxu0 %v1095_v29 }
 0x3f7   : > { %v1107_v61 = vmul.f32 %v2143_v60, %v3037_v42  ;;  %v1077_v1 = vpop.xlane.xlu1 %1076 }
 0x3f8   : > { %2150 = vrcp.f32 %v1077_v1  ;;  %v1065_v12 = vpop.xlane.xlu0 %1064 }
 0x3f9   : > { %1290 = vst [vmem:[%s3084_s0 + $0x48] sm:$0xff] %v1107_v61  ;;  %2152 = vrcp.f32 %v1065_v12 }
 0x3fa   : > { %v2145_v15 = vpop.eup %2144 }
 0x3fb   : > { %v1083_v19 = vpop.xlane.xlu1 %1082  ;;  %v1105_v30 = vmul.f32 %v2145_v15, %v3042_v50 }
 0x3fc   : > { %2154 = vrcp.f32 %v1083_v19  ;;  %v1069_v33 = vpop.xlane.xlu0 %1068 }
 0x3fd   : > { %2156 = vrcp.f32 %v1069_v33  ;;  %1767 = vmatprep.mubr.f32.mxu1 %v1105_v30  ;;  %1289 = vst [vmem:[%s3084_s0 + $0x40] sm:$0xff] %v1105_v30 }
 0x3fe   : > { %v2147_v37 = vpop.eup %2146  ;;  %1768 = vmatmul.mubr.f32.vlgmr.msra.gmra.mrb[48].mxu1 %v1107_v61 }
 0x3ff   : > { %v2149_v48 = vpop.eup %2148  ;;  %v1081_v51 = vpop.xlane.xlu1 %1080  ;;  %v1111_v56 = vmul.f32 %v2147_v37, %v3046_v58 }
 0x400   : > { %2158 = vrcp.f32 %v1081_v51  ;;  %v1071_v6 = vpop.xlane.xlu0 %1070  ;;  %v1099_v9 = vmul.f32 %v2149_v48, %v3048_v59 }
 0x401   : > { %2160 = vrcp.f32 %v1071_v6  ;;  %1292 = vst [vmem:[%s3084_s0 + $0x58] sm:$0xff] %v1111_v56 }
 0x402   : > { %v2151_v14 = vpop.eup %2150  ;;  %1286 = vst [vmem:[%s3084_s0 + $0x28] sm:$0xff] %v1099_v9 }
 0x403   : > { %v2153_v27 = vpop.eup %2152  ;;  %v1085_v31 = vpop.xlane.xlu1 %1084  ;;  %v1109_v36 = vmul.f32 %v2151_v14, %v3053_v2 }
 0x404   : > { %2162 = vrcp.f32 %v1085_v31  ;;  %v1097_v38 = vmul.f32 %v2153_v27, %v3055_v3 }
 0x405   : > { %1770 = vmatprep.mubr.f32.mxu1 %v1109_v36  ;;  %1291 = vst [vmem:[%s3084_s0 + $0x50] sm:$0xff] %v1109_v36 }
 0x406   : > { %v2155_v39 = vpop.eup %2154  ;;  %1761 = vmatprep.mubr.f32.mxu0 %v1097_v38  ;;  %1285 = vst [vmem:[%s3084_s0 + $0x20] sm:$0xff] %v1097_v38  ;;  %1771 = vmatmul.mubr.f32.gmra.mrb[50].mxu1 %v1111_v56 }
 0x407   : > { %v2157_v40 = vpop.eup %2156  ;;  %1762 = vmatmul.mubr.f32.gmra.mrb[36].mxu0 %v1099_v9  ;;  %v1087_v41 = vpop.xlane.xlu1 %1086  ;;  %v1115_v42 = vmul.f32 %v2155_v39, %v3059_v5 }
 0x408   : > { %2164 = vrcp.f32 %v1087_v41  ;;  %v1101_v43 = vmul.f32 %v2157_v40, %v3061_v7 }
 0x409   : > { %1294 = vst [vmem:[%s3084_s0 + $0x68] sm:$0xff] %v1115_v42 }
 0x40a   : > { %v2159_v44 = vpop.eup %2158  ;;  %1764 = vmatprep.mubr.f32.mxu0 %v1101_v43  ;;  %1287 = vst [vmem:[%s3084_s0 + $0x30] sm:$0xff] %v1101_v43 }
 0x40b   : > { %v2161_v45 = vpop.eup %2160  ;;  %v1113_v46 = vmul.f32 %v2159_v44, %v3065_v8 }
 0x40c   : > { %v1103_v47 = vmul.f32 %v2161_v45, %v3067_v10 }
 0x40d   : > { %1773 = vmatprep.mubr.f32.mxu1 %v1113_v46  ;;  %1293 = vst [vmem:[%s3084_s0 + $0x60] sm:$0xff] %v1113_v46 }
 0x40e   : > { %v2163_v49 = vpop.eup %2162  ;;  %1765 = vmatmul.mubr.f32.gmra.mrb[38].mxu0 %v1103_v47  ;;  %1288 = vst [vmem:[%s3084_s0 + $0x38] sm:$0xff] %v1103_v47  ;;  %1774 = vmatmul.mubr.f32.gmra.mrb[52].mxu1 %v1115_v42 }
 0x40f   : > { %v1117_v50 = vmul.f32 %v2163_v49, %v3071_v11 }
 0x411   : > { %1776 = vmatprep.mubr.f32.mxu1 %v1117_v50  ;;  %1295 = vst [vmem:[%s3084_s0 + $0x70] sm:$0xff] %v1117_v50 }
 0x412   : > { %v2165_v53 = vpop.eup %2164 }
 0x413   : > { %v1119_v54 = vmul.f32 %v2165_v53, %v3074_v13 }
 0x415   : > { %1777 = vmatmul.mubr.f32.gmra.mrb[54].mxu1 %v1119_v54  ;;  %1296 = vst [vmem:[%s3084_s0 + $0x78] sm:$0xff] %v1119_v54 }
 0x416   : > { %2239 = shalt.err (!%p2236_p4)
}
 0x417   : > { %s2240_s0 = scalar_lea.hbm %s3124_s11, 2048  ;;  %s2244_s4 = scalar_lea.hbm %s3316_s10, 8192 }
 0x418   : > { %p2241_p3 = scmp.ne.s32.totalorder %s3124_s11, %s2240_s0  ;;  %p2245_p6 = scmp.lt.u32.totalorder %s3124_s11, %s3316_s10 }
 0x419   : > { %p2246_p1 = scmp.lt.u32.totalorder %s2244_s4, %s2240_s0  ;;  %p2248_p9 = scmp.lt.u32.totalorder %s2240_s0, %s3124_s11 }
 0x41a   : > { %p2242_p7 = pnand %p2241_p3, %p3317_p11 }
 0x41b   : > { %p2247_p12 = por %p2246_p1, %p2245_p6 }
 0x41c   : > { %p2243_p13 = pneg %p2242_p7 }
 0x41d   : > { %p2249_p2 = por %p2248_p9, %p2247_p12 }
 0x41f   : > { %p2250_p10 = pnand %p2249_p2, %p2243_p13 }
 0x421   : > { %2253 = shalt.err (!%p2250_p10)
}
 0x422   : > { %s2417_s3 = smov 128   ;;  %s2418_s12 = smov 8  }
 0x423   : > { %1964 = dma.vmem_to_hbm [thread:$0]  (%p3317_p11), %s3127_s9, 2048, %s3124_s11, %s1303_s16, %s2417_s3, %s2417_s3, %s2418_s12  }
 0x424   : > { %s3318_s7 = sshll.u32 %s3078_s28, 7  ;;  %s1314_s11 = sadd.s32 %s2392_s27, %s1515_s8 }
 0x425   : > { %s3158_s21 = scalar_lea.vmem [#allocation7], %s3318_s7  ;;  %s1516_s9 = sshll.u32 %s1314_s11, 7 }
 0x426   : > { %s1317_s16 = sshll.u32 %s3158_s21, 4  ;;  %s3319_s4 = sld [smem:[#allocation22_spill]]  ;;  %s3183_s16 = int_to_ptr.vmem [resolvable:$true] %s1317_s16 }
 0x427   : > { %s1298_s27 = scalar_lea.sflag [#allocation4], %s3078_s28  ;;  %s2254_s30 = scalar_lea.vmem %s3183_s16, 2048 }
 0x428   : > { %p2255_p8 = scmp.ne.s32.totalorder %s3183_s16, %s2254_s30  ;;  %s2419_s8 = smov [#allocation7]  }
 0x429   : > { %s2258_s29 = sshll.u32 %s2419_s8, 4  ;;  %s2259_s29 = int_to_ptr.vmem [resolvable:$false] %s2258_s29 }
 0x42a   : > { %p2256_p5 = pnand %p2255_p8, %p3317_p11  ;;  %s2260_s7 = scalar_lea.vmem %s2259_s29, 4096 }
 0x42b   : > { %p2261_p4 = scmp.lt.s32.totalorder %s3183_s16, %s2259_s29  ;;  %p2262_p3 = scmp.lt.s32.totalorder %s2260_s7, %s2254_s30 }
 0x42c   : > { %s3181_s13 = scalar_lea.hbm %s3319_s4, %s1516_s9  ;;  %p2257_p0 = pneg %p2256_p5 }
 0x42d   : > { %p2263_p7 = por %p2262_p3, %p2261_p4 }
 0x42f   : > { %p2264_p13 = pnand %p2263_p7, %p2257_p0 }
 0x4c1   : > { %v1757_v55 = vpop.f32.mrb[32].mxu0 }
 0x4c2   : > { %1266 = vst [vmem:[%s3158_s21 + $0x8] sm:$0xff] %v1757_v55  ;;  %v1186_v57 = vpop.f32.mrb[33].mxu0 }
 0x4c3   : > { %1265 = vst [vmem:[%s3158_s21] sm:$0xff] %v1186_v57 }
 0x4c9   : > { %v1760_v58 = vpop.f32.mrb[34].mxu0 }
 0x4ca   : > { %1268 = vst [vmem:[%s3158_s21 + $0x18] sm:$0xff] %v1760_v58  ;;  %v1196_v59 = vpop.f32.mrb[35].mxu0 }
 0x4cb   : > { %1267 = vst [vmem:[%s3158_s21 + $0x10] sm:$0xff] %v1196_v59 }
 0x4d1   : > { %v1769_v62 = vpop.f32.mrb[48].mxu1 }
 0x4d2   : > { %1274 = vst [vmem:[%s3158_s21 + $0x48] sm:$0xff] %v1769_v62  ;;  %v1226_v63 = vpop.f32.mrb[49].mxu1 }
 0x4d3   : > { %1273 = vst [vmem:[%s3158_s21 + $0x40] sm:$0xff] %v1226_v63 }
 0x4d9   : > { %v1772_v0 = vpop.f32.mrb[50].mxu1 }
 0x4da   : > { %1276 = vst [vmem:[%s3158_s21 + $0x58] sm:$0xff] %v1772_v0  ;;  %v1763_v2 = vpop.f32.mrb[36].mxu0  ;;  %v1236_v3 = vpop.f32.mrb[51].mxu1 }
 0x4db   : > { %1270 = vst [vmem:[%s3158_s21 + $0x28] sm:$0xff] %v1763_v2  ;;  %1275 = vst [vmem:[%s3158_s21 + $0x50] sm:$0xff] %v1236_v3  ;;  %v1206_v4 = vpop.f32.mrb[37].mxu0 }
 0x4dc   : > { %1269 = vst [vmem:[%s3158_s21 + $0x20] sm:$0xff] %v1206_v4 }
 0x4e1   : > { %v1766_v5 = vpop.f32.mrb[38].mxu0  ;;  %v1775_v7 = vpop.f32.mrb[52].mxu1 }
 0x4e2   : > { %1272 = vst [vmem:[%s3158_s21 + $0x38] sm:$0xff] %v1766_v5  ;;  %1278 = vst [vmem:[%s3158_s21 + $0x68] sm:$0xff] %v1775_v7  ;;  %v1216_v8 = vpop.f32.mrb[39].mxu0  ;;  %v1246_v10 = vpop.f32.mrb[53].mxu1 }
 0x4e3   : > { %1271 = vst [vmem:[%s3158_s21 + $0x30] sm:$0xff] %v1216_v8  ;;  %1277 = vst [vmem:[%s3158_s21 + $0x60] sm:$0xff] %v1246_v10 }
 0x4e8   : > { %v1778_v11 = vpop.f32.mrb[54].mxu1 }
 0x4e9   : > { %1280 = vst [vmem:[%s3158_s21 + $0x78] sm:$0xff] %v1778_v11  ;;  %v1256_v13 = vpop.f32.mrb[55].mxu1 }
 0x4ea   : > { %1279 = vst [vmem:[%s3158_s21 + $0x70] sm:$0xff] %v1256_v13 }
 0x4eb   : > { %2267 = shalt.err (!%p2264_p13)
}
 0x4ec   : > { %s2268_s21 = scalar_lea.hbm %s3181_s13, 2048  ;;  %s2272_s0 = scalar_lea.hbm %s3319_s4, 8192 }
 0x4ed   : > { %p2269_p6 = scmp.ne.s32.totalorder %s3181_s13, %s2268_s21  ;;  %p2273_p9 = scmp.lt.u32.totalorder %s3181_s13, %s3319_s4 }
 0x4ee   : > { %p2274_p2 = scmp.lt.u32.totalorder %s2272_s0, %s2268_s21  ;;  %p2276_p8 = scmp.lt.u32.totalorder %s2268_s21, %s3181_s13 }
 0x4ef   : > { %p2270_p1 = pnand %p2269_p6, %p3317_p11 }
 0x4f0   : > { %p2275_p10 = por %p2274_p2, %p2273_p9 }
 0x4f1   : > { %p2271_p12 = pneg %p2270_p1 }
 0x4f2   : > { %p2277_p5 = por %p2276_p8, %p2275_p10 }
 0x4f4   : > { %p2278_p0 = pnand %p2277_p5, %p2271_p12 }
 0x4f6   : > { %2281 = shalt.err (!%p2278_p0)
}
 0x4f7   : > { %s2420_s30 = smov 256  }
 0x4f8   : > { %1963 = dma.vmem_to_hbm [thread:$0]  (%p3317_p11), %s3183_s16, 2048, %s3181_s13, %s1298_s27, %s2417_s3, %s2420_s30, %s2418_s12  }
 0x4f9 PF: > { %p1982_p4 = scmp.ge.s32.totalorder %s2408_s6, 2  ;;  %s1350_s29 = sand.u32 1, %s2356_s18  }
 0x4fa   : > { %p3320_p3 = scmp.ne.s32.totalorder %s3307_s15, 0  ;;  %s1351_s7 = scalar_lea.sflag [#allocation4], %s1350_s29 }
 0x4fc   : > { %p1975_p7 = pnand %p1982_p4, %p3320_p3 }
 0x4fe   : > { %2347 = dma.done.wait (!%p1975_p7), %s1351_s7, 2048  }
 0x4ff   : > { %2349 = vsyncadd (!%p1975_p7), %s1351_s7, 4294965248  ;;  %s1360_s21 = scalar_lea.sflag [#allocation9], %s1350_s29 }
 0x500   : > { %2351 = dma.done.wait (!%p1975_p7), %s1360_s21, 2048  }
 0x501   : > { %2353 = vsyncadd (!%p1975_p7), %s1360_s21, 4294965248  ;;  %s28_s6 = sadd.s32 1, %s2408_s6   ;;  %s3322_s27 = sld [smem:[#allocation15_spill]] }
 0x502   : > { %p3218_p13 = scmp.ge.s32.totalorder %s28_s6, 6   ;;  %s3323_s28 = sld [smem:[#allocation16_spill]] }
 0x503   : > { %s3324_s29 = sld [smem:[#allocation17_spill]]  ;;  %s3325_s30 = sld [smem:[#allocation18_spill]] }
 0x504   : > { %s3326_s18 = smov %s2360_s19  ;;  %s3327_s19 = smov %s2364_s20 }
 0x505   : > { %s3328_s20 = smov %s2642_s1  ;;  %s3329_s21 = smov %s2372_s22 }
 0x506   : > { %s3330_s22 = smov %s2376_s23  ;;  %s3331_s23 = smov %s2624_s5 }
 0x507   : > { %s3332_s24 = smov %s2384_s25  ;;  %s3333_s25 = smov %s2388_s26 }
 0x508   : > { %s3334_s26 = smov %s2639_s14  ;;  %27 = sbr.rel (!%p3218_p13) target bundleno = 20 (0x14), region = 117 }
 0x50f   :  { %1365 = vsyncpa [#allocation3], 1 }
 0x510   :  { %1367 = vsyncpa [#allocation3 + $0x1], 1 }
 0x511   :  { %1368 = vsyncpa [#allocation6], 1 }
 0x512   :  { %1370 = vsyncpa [#allocation6 + $0x1], 1 }
 0x513   :  { %1371 = vsyncpa [#allocation4], 1 }
 0x514   :  { %1373 = vsyncpa [#allocation4 + $0x1], 1 }
 0x515   :  { %1374 = vsyncpa [#allocation9], 1 }
 0x516   :  { %1376 = vsyncpa [#allocation9 + $0x1], 1 }

</bundles_post_ra>
